<compile_context>
chip_gen: v6e
topology: v6e:2x2x1
jax: 0.10.0
libtpu: 0.0.40
codegen_flags: <defaults>
</compile_context>

<pallas_src>
import math

import jax
import jax.numpy as jnp
from jax import lax
from jax.experimental import pallas as pl
from jax.experimental.pallas import tpu as pltpu

# ----------------------------- small synthetic config -----------------------------
B = 2            # batch
C_IN = 4         # EEG channels (orig 127)
E = 8            # electrodes  (orig 96)
T = 32           # time samples (orig ~512)
CC = 8           # conv out channels (orig 32)
D = 32           # model dim (orig 512)
H = 4            # attention heads (orig 8)
DH = D // H      # head dim
N_BLOCKS = 3
N_CLASSES = 8    # orig 40
LN_EPS = 1e-5
BN_EPS = 1e-5

KW = 8                               # conv kernel width / stride over time
C8 = C_IN * KW
T_PAD = T + 3                        # ZeroPad2d((1, 2, 0, 0))
T_OUT = (T_PAD - KW) // KW + 1       # conv output time steps
ET = E * T_OUT
N_TOK = T_OUT + 1                    # + prepended time token (orig 65)
N_PAD = ((N_TOK + 7) // 8) * 8       # token count padded to a sublane multiple
ATT_SCALE = 1.0 / math.sqrt(DH)
NEG_BIG = -1e9                       # pad-key mask (finite, avoids NaN rows)
NV = 10                              # consolidated per-layer vector rows

# batch groups: outer "parallel" grid axis (megacore on v7x), weights streamed per group
BG = 2 if (B % 2 == 0 and B >= 2) else 1
BPG = B // BG

# BatchNorm2d eval-mode with default running stats -> scalar scale (shift == 0).
BN_SCALE = float(1.0 / math.sqrt(1.0 + BN_EPS))


def _layernorm(x, g, b):
    mu = jnp.mean(x, axis=-1, keepdims=True)
    var = jnp.mean((x - mu) ** 2, axis=-1, keepdims=True)
    return (x - mu) * lax.rsqrt(var + LN_EPS) * g + b


# ================================ embedding kernel ================================

def eeg_embed_kernel(xprep_ref, wconv_ref, wmap_ref, bmap_ref, eg_ref, eb_ref, tt_ref,
                     seq_ref):
    """Grid = (batch,).  Conv-as-matmul + mapping + ReLU + LayerNorm + time token."""
    xw = xprep_ref[0]                                              # (E*T_OUT, C8) f32
    feat = jnp.dot(xw.astype(jnp.bfloat16), wconv_ref[...],
                   preferred_element_type=jnp.float32)             # (E*T_OUT, CC)
    # per-electrode blocks are contiguous rows; merge along lanes -> (T_OUT, E*CC)
    map_in = jnp.concatenate(
        [feat[e * T_OUT:(e + 1) * T_OUT, :] for e in range(E)], axis=-1)
    h = jnp.dot(map_in.astype(jnp.bfloat16), wmap_ref[...],
                preferred_element_type=jnp.float32) + bmap_ref[...]  # (T_OUT, D)
    h = jnp.maximum(h, 0.0)                                          # ReLU
    h = _layernorm(h, eg_ref[...], eb_ref[...])                      # LayerNorm(D)
    pieces = [tt_ref[...], h]
    if N_PAD > N_TOK:
        pieces.append(jnp.zeros((N_PAD - N_TOK, D), jnp.float32))
    seq_ref[0] = jnp.concatenate(pieces, axis=0)                     # (N_PAD, D)


# ============================ transformer-stack kernel ============================

def eeg_stack_kernel(seq0_ref, wqkv_ref, wo_ref, w1_ref, w2_ref, rel_ref, lvec_ref,
                     wc_ref, bc_ref, probs_ref, seq_ref):
    """Grid = (batch_group g, layer l, batch_in_group b).

    Weights are indexed by l only (streamed once per layer per group); the residual
    streams of the group live in the VMEM scratch `seq_ref` for the whole layer loop.
    """
    l = pl.program_id(1)
    bi = pl.program_id(2)

    @pl.when(l == 0)
    def _load():
        seq_ref[bi] = seq0_ref[0]

    x = seq_ref[bi]                                                  # (N_PAD, D) f32
    lv = lvec_ref[0]                                                 # (NV, D)  f32

    # ---------------- pre-LN MHSA with relative-position bias ----------------
    xn = _layernorm(x, lv[0:1, :], lv[1:2, :])
    qkv = jnp.dot(xn.astype(jnp.bfloat16), wqkv_ref[0],
                  preferred_element_type=jnp.float32)                # (N_PAD, 3D)
    q = qkv[:, 0:D] + lv[2:3, :]
    k = qkv[:, D:2 * D] + lv[3:4, :]
    v = qkv[:, 2 * D:3 * D] + lv[4:5, :]

    def split_heads(t):                                              # (N_PAD, D) -> (H, N_PAD, DH)
        return jnp.stack([t[:, h * DH:(h + 1) * DH] for h in range(H)], axis=0)

    qh = split_heads(q).astype(jnp.bfloat16)
    kh = split_heads(k).astype(jnp.bfloat16)
    vh = split_heads(v).astype(jnp.bfloat16)

    s = jnp.einsum('hnd,hmd->hnm', qh, kh,
                   preferred_element_type=jnp.float32) * ATT_SCALE   # (H, N, N)
    s = s + rel_ref[0]                                               # rel bias (+ pad mask)
    s = s - jnp.max(s, axis=-1, keepdims=True)
    p = jnp.exp(s)
    p = p * pl.reciprocal(jnp.sum(p, axis=-1, keepdims=True), approx=True)
    o = jnp.einsum('hnm,hmd->hnd', p.astype(jnp.bfloat16), vh,
                   preferred_element_type=jnp.float32)               # (H, N, DH)
    om = jnp.concatenate([o[h] for h in range(H)], axis=-1)          # (N_PAD, D)
    ao = jnp.dot(om.astype(jnp.bfloat16), wo_ref[0],
                 preferred_element_type=jnp.float32) + lv[5:6, :]
    x = x + ao                                                       # residual

    # ----------------------------- GELU MLP (ratio 1) -----------------------------
    xn2 = _layernorm(x, lv[6:7, :], lv[7:8, :])
    h1 = jnp.dot(xn2.astype(jnp.bfloat16), w1_ref[0],
                 preferred_element_type=jnp.float32) + lv[8:9, :]
    h1 = jax.nn.gelu(h1, approximate=True)
    h2 = jnp.dot(h1.astype(jnp.bfloat16), w2_ref[0],
                 preferred_element_type=jnp.float32) + lv[9:10, :]
    x = x + h2                                                       # residual
    seq_ref[bi] = x

    # ---------------- classifier head (token 0) after the last layer ----------------
    @pl.when(l == pl.num_programs(1) - 1)
    def _classify():
        cls = x[0:1, :]                                              # (1, D)
        logits = jnp.dot(cls, wc_ref[...],
                         preferred_element_type=jnp.float32) + bc_ref[...]
        m = jnp.max(logits, axis=-1, keepdims=True)
        e = jnp.exp(logits - m)
        probs_ref[0] = e / jnp.sum(e, axis=-1, keepdims=True)


# ================================ model forward ====================================

@jax.jit
def eeg_transformer_forward(x, packed):
    # layout plumbing only: ZeroPad2d((1,2,0,0)) + stride-8 window extraction.
    x_pad = jnp.pad(x, ((0, 0), (0, 0), (0, 0), (1, 2)))
    win = x_pad[:, :, :, :T_OUT * KW].reshape(B, C_IN, E, T_OUT, KW)
    # xprep[b, e*T_OUT + t, c*KW + k] = x_pad[b, c, e, t*KW + k]
    xprep = jnp.transpose(win, (0, 2, 3, 1, 4)).reshape(B, ET, C8)

    vmem_cp = dict(vmem_limit_bytes=64 * 1024 * 1024)

    # ---- stage 1: embedding (separate call so xprep is not resident during the stack) ----
    seq0 = pl.pallas_call(
        eeg_embed_kernel,
        out_shape=jax.ShapeDtypeStruct((B, N_PAD, D), jnp.float32),
        grid_spec=pltpu.PrefetchScalarGridSpec(
            num_scalar_prefetch=0,
            grid=(B,),
            in_specs=[
                pl.BlockSpec((1, ET, C8), lambda b: (b, 0, 0)),      # xprep
                pl.BlockSpec((C8, CC), lambda b: (0, 0)),            # conv weight (bf16)
                pl.BlockSpec((E * CC, D), lambda b: (0, 0)),         # mapping weight (bf16)
                pl.BlockSpec((1, D), lambda b: (0, 0)),              # mapping bias
                pl.BlockSpec((1, D), lambda b: (0, 0)),              # embed LN gamma
                pl.BlockSpec((1, D), lambda b: (0, 0)),              # embed LN beta
                pl.BlockSpec((1, D), lambda b: (0, 0)),              # time token
            ],
            out_specs=pl.BlockSpec((1, N_PAD, D), lambda b: (b, 0, 0)),
        ),
        compiler_params=pltpu.CompilerParams(
            dimension_semantics=("parallel",), **vmem_cp),
    )(xprep, packed['wconv'], packed['wmap'], packed['bmap'],
      packed['eln_g'], packed['eln_b'], packed['tt'])

    # ---- stage 2: transformer stack + classifier (layer-streamed weights) ----
    wmap3 = lambda g, l, b: (l, 0, 0)
    wmap4 = lambda g, l, b: (l, 0, 0, 0)
    const2 = lambda g, l, b: (0, 0)
    batmap = lambda g, l, b: (g * BPG + b, 0, 0)

    probs = pl.pallas_call(
        eeg_stack_kernel,
        out_shape=jax.ShapeDtypeStruct((B, 1, N_CLASSES), jnp.float32),
        grid_spec=pltpu.PrefetchScalarGridSpec(
            num_scalar_prefetch=0,
            grid=(BG, N_BLOCKS, BPG),
            in_specs=[
                pl.BlockSpec((1, N_PAD, D), batmap),                 # embedded sequence
                pl.BlockSpec((1, D, 3 * D), wmap3),                  # fused QKV weight (bf16)
                pl.BlockSpec((1, D, D), wmap3),                      # output proj (bf16)
                pl.BlockSpec((1, D, D), wmap3),                      # MLP w1 (bf16)
                pl.BlockSpec((1, D, D), wmap3),                      # MLP w2 (bf16)
                pl.BlockSpec((1, H, N_PAD, N_PAD), wmap4),           # rel-pos bias + pad mask
                pl.BlockSpec((1, NV, D), wmap3),                     # consolidated LN/bias rows
                pl.BlockSpec((D, N_CLASSES), const2),                # classifier weight
                pl.BlockSpec((1, N_CLASSES), const2),                # classifier bias
            ],
            out_specs=pl.BlockSpec((1, 1, N_CLASSES),
                                   lambda g, l, b: (g * BPG + b, 0, 0)),
            scratch_shapes=[pltpu.VMEM((BPG, N_PAD, D), jnp.float32)],
        ),
        compiler_params=pltpu.CompilerParams(
            dimension_semantics=("parallel", "arbitrary", "arbitrary"), **vmem_cp),
    )(seq0, packed['wqkv'], packed['wo'], packed['w1'], packed['w2'],
      packed['rel'], packed['lvec'], packed['wc'], packed['bc'])
    return probs.reshape(B, N_CLASSES)


# ============================== parameter creation =================================

def init_params(key):
    keys = iter(jax.random.split(key, 128))

    def nrm(shape, scale=0.02):
        return scale * jax.random.normal(next(keys), shape, dtype=jnp.float32)

    params = {}
    # block_1 conv: torch weight (CC, C_IN, 1, KW) -> (CC, C_IN*KW)
    params['wconv'] = nrm((CC, C_IN, 1, KW)).reshape(CC, C8)
    # mapping Linear: torch weight (D, CC*E); store W.T reshaped to (CC, E, D)
    wmap_t = nrm((D, CC * E)).T
    params['wmap3'] = wmap_t.reshape(CC, E, D)
    params['bmap'] = nrm((1, D))
    params['ln_g'] = jnp.ones((1, D), jnp.float32)
    params['ln_b'] = jnp.zeros((1, D), jnp.float32)
    params['time_token'] = jnp.zeros((1, 1, D), jnp.float32)

    idx = jnp.arange(N_TOK)
    rel_index = idx[:, None] - idx[None, :] + (N_TOK - 1)

    blocks = []
    for _ in range(N_BLOCKS):
        bp = {
            'ln1_g': jnp.ones((1, D), jnp.float32),
            'ln1_b': jnp.zeros((1, D), jnp.float32),
            'wq_t': nrm((D, D)).T, 'bq': nrm((1, D)),
            'wk_t': nrm((D, D)).T, 'bk': nrm((1, D)),
            'wv_t': nrm((D, D)).T, 'bv': nrm((1, D)),
            'wo_t': nrm((D, D)).T, 'bo': nrm((1, D)),
            'ln2_g': jnp.ones((1, D), jnp.float32),
            'ln2_b': jnp.zeros((1, D), jnp.float32),
            'w1_t': nrm((D, D)).T, 'b1': nrm((1, D)),   # mlp_dilator=1 -> hidden = D
            'w2_t': nrm((D, D)).T, 'b2': nrm((1, D)),
        }
        rel_table = nrm((2 * N_TOK - 1, H))
        bp['rel_bias'] = jnp.transpose(rel_table[rel_index], (2, 0, 1))  # (H, N, N)
        blocks.append(bp)
    params['blocks'] = blocks

    params['wc_t'] = nrm((N_CLASSES, D)).T
    params['bc'] = nrm((1, N_CLASSES))
    return params


def pack_params(params):
    """Reorganise the logical parameters into the layouts the fused kernels consume."""
    bf = jnp.bfloat16
    packed = {
        'wconv': (params['wconv'].T * BN_SCALE).astype(bf),                 # (C8, CC)
        'wmap': jnp.transpose(params['wmap3'], (1, 0, 2)).reshape(E * CC, D).astype(bf),
        'bmap': params['bmap'],
        'eln_g': params['ln_g'], 'eln_b': params['ln_b'],
        'tt': params['time_token'].reshape(1, D),
        'wc': params['wc_t'], 'bc': params['bc'],
    }
    wqkv, wo, w1, w2, rel, lvec = [], [], [], [], [], []
    for bp in params['blocks']:
        wqkv.append(jnp.concatenate([bp['wq_t'], bp['wk_t'], bp['wv_t']],
                                    axis=1).astype(bf))                     # (D, 3D)
        wo.append(bp['wo_t'].astype(bf))
        w1.append(bp['w1_t'].astype(bf))
        w2.append(bp['w2_t'].astype(bf))
        # rel bias padded to (H, N_PAD, N_PAD); pad key columns masked with -1e9,
        # pad query rows get 0 bias over real keys so softmax stays finite.
        r = jnp.full((H, N_PAD, N_PAD), NEG_BIG, jnp.float32)
        r = r.at[:, :N_TOK, :N_TOK].set(bp['rel_bias'])
        r = r.at[:, N_TOK:, :N_TOK].set(0.0)
        rel.append(r)
        lvec.append(jnp.concatenate(
            [bp['ln1_g'], bp['ln1_b'], bp['bq'], bp['bk'], bp['bv'], bp['bo'],
             bp['ln2_g'], bp['ln2_b'], bp['b1'], bp['b2']], axis=0))        # (NV, D)
    packed['wqkv'] = jnp.stack(wqkv, axis=0)
    packed['wo'] = jnp.stack(wo, axis=0)
    packed['w1'] = jnp.stack(w1, axis=0)
    packed['w2'] = jnp.stack(w2, axis=0)
    packed['rel'] = jnp.stack(rel, axis=0)
    packed['lvec'] = jnp.stack(lvec, axis=0)
    return packed


# ============================== pure-JAX reference =================================

def _ref_block(x, bp):
    xn = _layernorm(x, bp['ln1_g'], bp['ln1_b'])
    q = xn @ bp['wq_t'] + bp['bq']
    k = xn @ bp['wk_t'] + bp['bk']
    v = xn @ bp['wv_t'] + bp['bv']
    split = lambda t: jnp.transpose(t.reshape(B, N_TOK, H, DH), (0, 2, 1, 3))
    qh, kh, vh = split(q), split(k), split(v)
    s = jnp.einsum('bhnd,bhmd->bhnm', qh, kh) / math.sqrt(DH) + bp['rel_bias'][None]
    p = jax.nn.softmax(s, axis=-1)
    o = jnp.einsum('bhnm,bhmd->bhnd', p, vh)
    o = jnp.transpose(o, (0, 2, 1, 3)).reshape(B, N_TOK, D)
    x = x + o @ bp['wo_t'] + bp['bo']
    xn2 = _layernorm(x, bp['ln2_g'], bp['ln2_b'])
    h1 = jax.nn.gelu(xn2 @ bp['w1_t'] + bp['b1'], approximate=True)
    return x + h1 @ bp['w2_t'] + bp['b2']


def reference_forward(x, params):
    xb = x * BN_SCALE
    x_pad = jnp.pad(xb, ((0, 0), (0, 0), (0, 0), (1, 2)))
    win = x_pad[:, :, :, :T_OUT * KW].reshape(B, C_IN, E, T_OUT, KW)
    wconv3 = params['wconv'].reshape(CC, C_IN, KW)
    feat = jnp.einsum('bcetk,ock->btoe', win, wconv3).reshape(B, T_OUT, CC * E)
    h = feat @ params['wmap3'].reshape(CC * E, D) + params['bmap']
    h = jnp.maximum(h, 0.0)
    h = _layernorm(h, params['ln_g'], params['ln_b'])
    seq = jnp.concatenate(
        [jnp.broadcast_to(params['time_token'], (B, 1, D)), h], axis=1)
    for bp in params['blocks']:
        seq = _ref_block(seq, bp)
    cls = seq[:, 0, :]
    return jax.nn.softmax(cls @ params['wc_t'] + params['bc'], axis=-1)


# ===================================== main ========================================

if __name__ == "__main__":
    key = jax.random.PRNGKey(0)
    k_x, k_p = jax.random.split(key)
    x = jax.random.normal(k_x, (B, C_IN, E, T), dtype=jnp.float32)  # NCHW
    params = init_params(k_p)
    packed = pack_params(params)

    out = jax.block_until_ready(eeg_transformer_forward(x, packed))
    assert out.shape == (B, N_CLASSES), out.shape

    ref = jax.block_until_ready(reference_forward(x, params))
    max_err = float(jnp.max(jnp.abs(out - ref)))
    row_sums = jnp.sum(out, axis=-1)
    assert max_err < 5e-2, f"mismatch vs reference: {max_err}"
    assert bool(jnp.all(jnp.abs(row_sums - 1.0) < 1e-3)), "softmax rows do not sum to 1"

    print("KERNEL_OK")
</pallas_src>

<mosaic_0001>
module attributes {stable_mosaic.version = 11 : i64} {
  func.func @eeg_embed_kernel(%arg0: i32, %arg1: memref<1x32x32xf32, #tpu.memory_space<vmem>>, %arg2: memref<32x8xbf16, #tpu.memory_space<vmem>>, %arg3: memref<64x32xbf16, #tpu.memory_space<vmem>>, %arg4: memref<1x32xf32, #tpu.memory_space<vmem>>, %arg5: memref<1x32xf32, #tpu.memory_space<vmem>>, %arg6: memref<1x32xf32, #tpu.memory_space<vmem>>, %arg7: memref<1x32xf32, #tpu.memory_space<vmem>>, %arg8: memref<1x8x32xf32, #tpu.memory_space<vmem>>) attributes {dimension_semantics = [#tpu.dimension_semantics<parallel>], iteration_bounds = array<i64: 2>, scalar_prefetch = 0 : i64, scratch_operands = 0 : i64, tpu.core_type = #tpu.core_type<tc>, window_params = [{transform_indices = @transform_0, window_bounds = array<i64: 1, 32, 32>}, {pipeline_mode = #tpu.pipeline_mode<synchronous>, transform_indices = @transform_1, window_bounds = array<i64: 32, 8>}, {pipeline_mode = #tpu.pipeline_mode<synchronous>, transform_indices = @transform_2, window_bounds = array<i64: 64, 32>}, {pipeline_mode = #tpu.pipeline_mode<synchronous>, transform_indices = @transform_3, window_bounds = array<i64: 1, 32>}, {pipeline_mode = #tpu.pipeline_mode<synchronous>, transform_indices = @transform_4, window_bounds = array<i64: 1, 32>}, {pipeline_mode = #tpu.pipeline_mode<synchronous>, transform_indices = @transform_5, window_bounds = array<i64: 1, 32>}, {pipeline_mode = #tpu.pipeline_mode<synchronous>, transform_indices = @transform_6, window_bounds = array<i64: 1, 32>}, {transform_indices = @transform_7, window_bounds = array<i64: 1, 8, 32>}]} {
    %c0 = arith.constant 0 : index
    %c0_0 = arith.constant 0 : index
    %c0_1 = arith.constant 0 : index
    %0 = vector.load %arg1[%c0, %c0_0, %c0_1] : memref<1x32x32xf32, #tpu.memory_space<vmem>>, vector<1x32x32xf32>
    %1 = vector.shape_cast %0 : vector<1x32x32xf32> to vector<32x32xf32>
    %2 = arith.truncf %1 : vector<32x32xf32> to vector<32x32xbf16>
    %c0_2 = arith.constant 0 : index
    %c0_3 = arith.constant 0 : index
    %3 = vector.load %arg2[%c0_2, %c0_3] : memref<32x8xbf16, #tpu.memory_space<vmem>>, vector<32x8xbf16>
    %cst = arith.constant dense<0.000000e+00> : vector<32x8xf32>
    %4 = tpu.matmul %2, %3, %cst {dimension_numbers = #tpu.dot_dimension_numbers<[1], [0], [0], [1], [0, 0, 1, 1], [], []>} : vector<32x32xbf16>, vector<32x8xbf16>, vector<32x8xf32> -> vector<32x8xf32>
    %5 = vector.extract_strided_slice %4 {offsets = [0, 0], sizes = [4, 8], strides = [1, 1]} : vector<32x8xf32> to vector<4x8xf32>
    %6 = vector.extract_strided_slice %4 {offsets = [4, 0], sizes = [4, 8], strides = [1, 1]} : vector<32x8xf32> to vector<4x8xf32>
    %7 = vector.extract_strided_slice %4 {offsets = [8, 0], sizes = [4, 8], strides = [1, 1]} : vector<32x8xf32> to vector<4x8xf32>
    %8 = vector.extract_strided_slice %4 {offsets = [12, 0], sizes = [4, 8], strides = [1, 1]} : vector<32x8xf32> to vector<4x8xf32>
    %9 = vector.extract_strided_slice %4 {offsets = [16, 0], sizes = [4, 8], strides = [1, 1]} : vector<32x8xf32> to vector<4x8xf32>
    %10 = vector.extract_strided_slice %4 {offsets = [20, 0], sizes = [4, 8], strides = [1, 1]} : vector<32x8xf32> to vector<4x8xf32>
    %11 = vector.extract_strided_slice %4 {offsets = [24, 0], sizes = [4, 8], strides = [1, 1]} : vector<32x8xf32> to vector<4x8xf32>
    %12 = vector.extract_strided_slice %4 {offsets = [28, 0], sizes = [4, 8], strides = [1, 1]} : vector<32x8xf32> to vector<4x8xf32>
    %13 = tpu.concatenate %5, %6, %7, %8, %9, %10, %11, %12 in 1 : vector<4x8xf32>, vector<4x8xf32>, vector<4x8xf32>, vector<4x8xf32>, vector<4x8xf32>, vector<4x8xf32>, vector<4x8xf32>, vector<4x8xf32> -> vector<4x64xf32>
    %14 = arith.truncf %13 : vector<4x64xf32> to vector<4x64xbf16>
    %c0_4 = arith.constant 0 : index
    %c0_5 = arith.constant 0 : index
    %15 = vector.load %arg3[%c0_4, %c0_5] : memref<64x32xbf16, #tpu.memory_space<vmem>>, vector<64x32xbf16>
    %cst_6 = arith.constant dense<0.000000e+00> : vector<4x32xf32>
    %16 = tpu.matmul %14, %15, %cst_6 {dimension_numbers = #tpu.dot_dimension_numbers<[1], [0], [0], [1], [0, 0, 1, 1], [], []>} : vector<4x64xbf16>, vector<64x32xbf16>, vector<4x32xf32> -> vector<4x32xf32>
    %c0_7 = arith.constant 0 : index
    %c0_8 = arith.constant 0 : index
    %17 = vector.load %arg4[%c0_7, %c0_8] : memref<1x32xf32, #tpu.memory_space<vmem>>, vector<1x32xf32>
    %18 = vector.broadcast %17 : vector<1x32xf32> to vector<4x32xf32>
    %19 = arith.addf %16, %18 : vector<4x32xf32>
    %cst_9 = arith.constant 0.000000e+00 : f32
    %20 = vector.broadcast %cst_9 : f32 to vector<4x32xf32>
    %21 = arith.maximumf %19, %20 : vector<4x32xf32>
    %c0_10 = arith.constant 0 : index
    %c0_11 = arith.constant 0 : index
    %22 = vector.load %arg5[%c0_10, %c0_11] : memref<1x32xf32, #tpu.memory_space<vmem>>, vector<1x32xf32>
    %c0_12 = arith.constant 0 : index
    %c0_13 = arith.constant 0 : index
    %23 = vector.load %arg6[%c0_12, %c0_13] : memref<1x32xf32, #tpu.memory_space<vmem>>, vector<1x32xf32>
    %cst_14 = arith.constant dense<0.000000e+00> : vector<4xf32>
    %24 = vector.multi_reduction <add>, %21, %cst_14 [1] : vector<4x32xf32> to vector<4xf32>
    %25 = vector.shape_cast %24 : vector<4xf32> to vector<4x1xf32>
    %cst_15 = arith.constant 3.200000e+01 : f32
    %26 = vector.broadcast %cst_15 : f32 to vector<4x1xf32>
    %27 = arith.divf %25, %26 : vector<4x1xf32>
    %28 = vector.broadcast %27 : vector<4x1xf32> to vector<4x32xf32>
    %29 = arith.subf %21, %28 : vector<4x32xf32>
    %30 = arith.mulf %29, %29 : vector<4x32xf32>
    %cst_16 = arith.constant dense<0.000000e+00> : vector<4xf32>
    %31 = vector.multi_reduction <add>, %30, %cst_16 [1] : vector<4x32xf32> to vector<4xf32>
    %32 = vector.shape_cast %31 : vector<4xf32> to vector<4x1xf32>
    %cst_17 = arith.constant 3.200000e+01 : f32
    %33 = vector.broadcast %cst_17 : f32 to vector<4x1xf32>
    %34 = arith.divf %32, %33 : vector<4x1xf32>
    %35 = vector.broadcast %27 : vector<4x1xf32> to vector<4x32xf32>
    %36 = arith.subf %21, %35 : vector<4x32xf32>
    %cst_18 = arith.constant 9.99999974E-6 : f32
    %37 = vector.broadcast %cst_18 : f32 to vector<4x1xf32>
    %38 = arith.addf %34, %37 : vector<4x1xf32>
    %39 = math.rsqrt %38 : vector<4x1xf32>
    %40 = vector.broadcast %39 : vector<4x1xf32> to vector<4x32xf32>
    %41 = arith.mulf %36, %40 : vector<4x32xf32>
    %42 = vector.broadcast %22 : vector<1x32xf32> to vector<4x32xf32>
    %43 = arith.mulf %41, %42 : vector<4x32xf32>
    %44 = vector.broadcast %23 : vector<1x32xf32> to vector<4x32xf32>
    %45 = arith.addf %43, %44 : vector<4x32xf32>
    %c0_19 = arith.constant 0 : index
    %c0_20 = arith.constant 0 : index
    %46 = vector.load %arg7[%c0_19, %c0_20] : memref<1x32xf32, #tpu.memory_space<vmem>>, vector<1x32xf32>
    %cst_21 = arith.constant 0.000000e+00 : f32
    %47 = vector.broadcast %cst_21 : f32 to vector<3x32xf32>
    %48 = tpu.concatenate %46, %45, %47 in 0 : vector<1x32xf32>, vector<4x32xf32>, vector<3x32xf32> -> vector<8x32xf32>
    %c0_22 = arith.constant 0 : index
    %c0_23 = arith.constant 0 : index
    %c0_24 = arith.constant 0 : index
    %49 = vector.load %arg8[%c0_22, %c0_23, %c0_24] : memref<1x8x32xf32, #tpu.memory_space<vmem>>, vector<1x8x32xf32>
    %50 = vector.shape_cast %49 : vector<1x8x32xf32> to vector<8x32xf32>
    %51 = vector.shape_cast %48 : vector<8x32xf32> to vector<1x8x32xf32>
    tpu.vector_store %arg8[%c0_22, %c0_23, %c0_24], %51 {strides = array<i32>} : memref<1x8x32xf32, #tpu.memory_space<vmem>>, vector<1x8x32xf32>,
    return
  }
  func.func @transform_0(%arg0: i32) -> (i32, i32, i32) {
    %c0_i32 = arith.constant 0 : i32
    %c0_i32_0 = arith.constant 0 : i32
    %c0_i32_1 = arith.constant 0 : i32
    return %arg0, %c0_i32, %c0_i32_0 : i32, i32, i32
  }
  func.func @transform_1(%arg0: i32) -> (i32, i32) {
    %c0_i32 = arith.constant 0 : i32
    %c0_i32_0 = arith.constant 0 : i32
    %c0_i32_1 = arith.constant 0 : i32
    return %c0_i32, %c0_i32_0 : i32, i32
  }
  func.func @transform_2(%arg0: i32) -> (i32, i32) {
    %c0_i32 = arith.constant 0 : i32
    %c0_i32_0 = arith.constant 0 : i32
    %c0_i32_1 = arith.constant 0 : i32
    return %c0_i32, %c0_i32_0 : i32, i32
  }
  func.func @transform_3(%arg0: i32) -> (i32, i32) {
    %c0_i32 = arith.constant 0 : i32
    %c0_i32_0 = arith.constant 0 : i32
    %c0_i32_1 = arith.constant 0 : i32
    return %c0_i32, %c0_i32_0 : i32, i32
  }
  func.func @transform_4(%arg0: i32) -> (i32, i32) {
    %c0_i32 = arith.constant 0 : i32
    %c0_i32_0 = arith.constant 0 : i32
    %c0_i32_1 = arith.constant 0 : i32
    return %c0_i32, %c0_i32_0 : i32, i32
  }
  func.func @transform_5(%arg0: i32) -> (i32, i32) {
    %c0_i32 = arith.constant 0 : i32
    %c0_i32_0 = arith.constant 0 : i32
    %c0_i32_1 = arith.constant 0 : i32
    return %c0_i32, %c0_i32_0 : i32, i32
  }
  func.func @transform_6(%arg0: i32) -> (i32, i32) {
    %c0_i32 = arith.constant 0 : i32
    %c0_i32_0 = arith.constant 0 : i32
    %c0_i32_1 = arith.constant 0 : i32
    return %c0_i32, %c0_i32_0 : i32, i32
  }
  func.func @transform_7(%arg0: i32) -> (i32, i32, i32) {
    %c0_i32 = arith.constant 0 : i32
    %c0_i32_0 = arith.constant 0 : i32
    %c0_i32_1 = arith.constant 0 : i32
    return %arg0, %c0_i32, %c0_i32_0 : i32, i32, i32
  }
}

module attributes {stable_mosaic.version = 11 : i64} {
  func.func @eeg_stack_kernel(%arg0: i32, %arg1: i32, %arg2: i32, %arg3: memref<1x8x32xf32, #tpu.memory_space<vmem>>, %arg4: memref<1x32x96xbf16, #tpu.memory_space<vmem>>, %arg5: memref<1x32x32xbf16, #tpu.memory_space<vmem>>, %arg6: memref<1x32x32xbf16, #tpu.memory_space<vmem>>, %arg7: memref<1x32x32xbf16, #tpu.memory_space<vmem>>, %arg8: memref<1x4x8x8xf32, #tpu.memory_space<vmem>>, %arg9: memref<1x10x32xf32, #tpu.memory_space<vmem>>, %arg10: memref<32x8xf32, #tpu.memory_space<vmem>>, %arg11: memref<1x8xf32, #tpu.memory_space<vmem>>, %arg12: memref<1x1x8xf32, #tpu.memory_space<vmem>>, %arg13: memref<1x8x32xf32, #tpu.memory_space<vmem>>) attributes {dimension_semantics = [#tpu.dimension_semantics<parallel>, #tpu.dimension_semantics<arbitrary>, #tpu.dimension_semantics<arbitrary>], iteration_bounds = array<i64: 2, 3, 1>, scalar_prefetch = 0 : i64, scratch_operands = 1 : i64, tpu.core_type = #tpu.core_type<tc>, window_params = [{transform_indices = @transform_0, window_bounds = array<i64: 1, 8, 32>}, {transform_indices = @transform_1, window_bounds = array<i64: 1, 32, 96>}, {transform_indices = @transform_2, window_bounds = array<i64: 1, 32, 32>}, {transform_indices = @transform_3, window_bounds = array<i64: 1, 32, 32>}, {transform_indices = @transform_4, window_bounds = array<i64: 1, 32, 32>}, {transform_indices = @transform_5, window_bounds = array<i64: 1, 4, 8, 8>}, {transform_indices = @transform_6, window_bounds = array<i64: 1, 10, 32>}, {pipeline_mode = #tpu.pipeline_mode<synchronous>, transform_indices = @transform_7, window_bounds = array<i64: 32, 8>}, {pipeline_mode = #tpu.pipeline_mode<synchronous>, transform_indices = @transform_8, window_bounds = array<i64: 1, 8>}, {transform_indices = @transform_9, window_bounds = array<i64: 1, 1, 8>}]} {
    %c0_i32 = arith.constant 0 : i32
    %0 = arith.cmpi eq, %arg1, %c0_i32 : i32
    %1 = arith.extui %0 : i1 to i32
    %c0_i32_0 = arith.constant 0 : i32
    %2 = arith.cmpi ne, %1, %c0_i32_0 : i32
    scf.if %2 {
      %c0_46 = arith.constant 0 : index
      %c0_47 = arith.constant 0 : index
      %c0_48 = arith.constant 0 : index
      %172 = vector.load %arg3[%c0_46, %c0_47, %c0_48] : memref<1x8x32xf32, #tpu.memory_space<vmem>>, vector<1x8x32xf32>
      %173 = vector.shape_cast %172 : vector<1x8x32xf32> to vector<8x32xf32>
      %174 = arith.index_cast %arg2 : i32 to index
      %c0_49 = arith.constant 0 : index
      %c0_50 = arith.constant 0 : index
      %175 = vector.load %arg13[%174, %c0_49, %c0_50] : memref<1x8x32xf32, #tpu.memory_space<vmem>>, vector<1x8x32xf32>
      %176 = vector.shape_cast %175 : vector<1x8x32xf32> to vector<8x32xf32>
      %177 = vector.shape_cast %173 : vector<8x32xf32> to vector<1x8x32xf32>
      tpu.vector_store %arg13[%174, %c0_49, %c0_50], %177 {strides = array<i32>} : memref<1x8x32xf32, #tpu.memory_space<vmem>>, vector<1x8x32xf32>,
    } else {
    }
    %3 = arith.index_cast %arg2 : i32 to index
    %c0 = arith.constant 0 : index
    %c0_1 = arith.constant 0 : index
    %4 = vector.load %arg13[%3, %c0, %c0_1] : memref<1x8x32xf32, #tpu.memory_space<vmem>>, vector<1x8x32xf32>
    %5 = vector.shape_cast %4 : vector<1x8x32xf32> to vector<8x32xf32>
    %c0_2 = arith.constant 0 : index
    %c0_3 = arith.constant 0 : index
    %c0_4 = arith.constant 0 : index
    %6 = vector.load %arg9[%c0_2, %c0_3, %c0_4] : memref<1x10x32xf32, #tpu.memory_space<vmem>>, vector<1x10x32xf32>
    %7 = vector.shape_cast %6 : vector<1x10x32xf32> to vector<10x32xf32>
    %8 = vector.extract_strided_slice %7 {offsets = [0, 0], sizes = [1, 32], strides = [1, 1]} : vector<10x32xf32> to vector<1x32xf32>
    %9 = vector.extract_strided_slice %7 {offsets = [1, 0], sizes = [1, 32], strides = [1, 1]} : vector<10x32xf32> to vector<1x32xf32>
    %cst = arith.constant dense<0.000000e+00> : vector<8xf32>
    %10 = vector.multi_reduction <add>, %5, %cst [1] : vector<8x32xf32> to vector<8xf32>
    %11 = vector.shape_cast %10 : vector<8xf32> to vector<8x1xf32>
    %cst_5 = arith.constant 3.200000e+01 : f32
    %12 = vector.broadcast %cst_5 : f32 to vector<8x1xf32>
    %13 = arith.divf %11, %12 : vector<8x1xf32>
    %14 = vector.broadcast %13 : vector<8x1xf32> to vector<8x32xf32>
    %15 = arith.subf %5, %14 : vector<8x32xf32>
    %16 = arith.mulf %15, %15 : vector<8x32xf32>
    %cst_6 = arith.constant dense<0.000000e+00> : vector<8xf32>
    %17 = vector.multi_reduction <add>, %16, %cst_6 [1] : vector<8x32xf32> to vector<8xf32>
    %18 = vector.shape_cast %17 : vector<8xf32> to vector<8x1xf32>
    %cst_7 = arith.constant 3.200000e+01 : f32
    %19 = vector.broadcast %cst_7 : f32 to vector<8x1xf32>
    %20 = arith.divf %18, %19 : vector<8x1xf32>
    %21 = vector.broadcast %13 : vector<8x1xf32> to vector<8x32xf32>
    %22 = arith.subf %5, %21 : vector<8x32xf32>
    %cst_8 = arith.constant 9.99999974E-6 : f32
    %23 = vector.broadcast %cst_8 : f32 to vector<8x1xf32>
    %24 = arith.addf %20, %23 : vector<8x1xf32>
    %25 = math.rsqrt %24 : vector<8x1xf32>
    %26 = vector.broadcast %25 : vector<8x1xf32> to vector<8x32xf32>
    %27 = arith.mulf %22, %26 : vector<8x32xf32>
    %28 = vector.broadcast %8 : vector<1x32xf32> to vector<8x32xf32>
    %29 = arith.mulf %27, %28 : vector<8x32xf32>
    %30 = vector.broadcast %9 : vector<1x32xf32> to vector<8x32xf32>
    %31 = arith.addf %29, %30 : vector<8x32xf32>
    %32 = arith.truncf %31 : vector<8x32xf32> to vector<8x32xbf16>
    %c0_9 = arith.constant 0 : index
    %c0_10 = arith.constant 0 : index
    %c0_11 = arith.constant 0 : index
    %33 = vector.load %arg4[%c0_9, %c0_10, %c0_11] : memref<1x32x96xbf16, #tpu.memory_space<vmem>>, vector<1x32x96xbf16>
    %34 = vector.shape_cast %33 : vector<1x32x96xbf16> to vector<32x96xbf16>
    %cst_12 = arith.constant dense<0.000000e+00> : vector<8x96xf32>
    %35 = tpu.matmul %32, %34, %cst_12 {dimension_numbers = #tpu.dot_dimension_numbers<[1], [0], [0], [1], [0, 0, 1, 1], [], []>} : vector<8x32xbf16>, vector<32x96xbf16>, vector<8x96xf32> -> vector<8x96xf32>
    %36 = vector.extract_strided_slice %35 {offsets = [0, 0], sizes = [8, 32], strides = [1, 1]} : vector<8x96xf32> to vector<8x32xf32>
    %37 = vector.extract_strided_slice %7 {offsets = [2, 0], sizes = [1, 32], strides = [1, 1]} : vector<10x32xf32> to vector<1x32xf32>
    %38 = vector.broadcast %37 : vector<1x32xf32> to vector<8x32xf32>
    %39 = arith.addf %36, %38 : vector<8x32xf32>
    %40 = vector.extract_strided_slice %35 {offsets = [0, 32], sizes = [8, 32], strides = [1, 1]} : vector<8x96xf32> to vector<8x32xf32>
    %41 = vector.extract_strided_slice %7 {offsets = [3, 0], sizes = [1, 32], strides = [1, 1]} : vector<10x32xf32> to vector<1x32xf32>
    %42 = vector.broadcast %41 : vector<1x32xf32> to vector<8x32xf32>
    %43 = arith.addf %40, %42 : vector<8x32xf32>
    %44 = vector.extract_strided_slice %35 {offsets = [0, 64], sizes = [8, 32], strides = [1, 1]} : vector<8x96xf32> to vector<8x32xf32>
    %45 = vector.extract_strided_slice %7 {offsets = [4, 0], sizes = [1, 32], strides = [1, 1]} : vector<10x32xf32> to vector<1x32xf32>
    %46 = vector.broadcast %45 : vector<1x32xf32> to vector<8x32xf32>
    %47 = arith.addf %44, %46 : vector<8x32xf32>
    %48 = vector.extract_strided_slice %39 {offsets = [0, 0], sizes = [8, 8], strides = [1, 1]} : vector<8x32xf32> to vector<8x8xf32>
    %49 = vector.extract_strided_slice %39 {offsets = [0, 8], sizes = [8, 8], strides = [1, 1]} : vector<8x32xf32> to vector<8x8xf32>
    %50 = vector.extract_strided_slice %39 {offsets = [0, 16], sizes = [8, 8], strides = [1, 1]} : vector<8x32xf32> to vector<8x8xf32>
    %51 = vector.extract_strided_slice %39 {offsets = [0, 24], sizes = [8, 8], strides = [1, 1]} : vector<8x32xf32> to vector<8x8xf32>
    %52 = vector.shape_cast %48 : vector<8x8xf32> to vector<1x8x8xf32>
    %53 = vector.shape_cast %49 : vector<8x8xf32> to vector<1x8x8xf32>
    %54 = vector.shape_cast %50 : vector<8x8xf32> to vector<1x8x8xf32>
    %55 = vector.shape_cast %51 : vector<8x8xf32> to vector<1x8x8xf32>
    %56 = tpu.concatenate %52, %53, %54, %55 in 0 : vector<1x8x8xf32>, vector<1x8x8xf32>, vector<1x8x8xf32>, vector<1x8x8xf32> -> vector<4x8x8xf32>
    %57 = arith.truncf %56 : vector<4x8x8xf32> to vector<4x8x8xbf16>
    %58 = vector.extract_strided_slice %43 {offsets = [0, 0], sizes = [8, 8], strides = [1, 1]} : vector<8x32xf32> to vector<8x8xf32>
    %59 = vector.extract_strided_slice %43 {offsets = [0, 8], sizes = [8, 8], strides = [1, 1]} : vector<8x32xf32> to vector<8x8xf32>
    %60 = vector.extract_strided_slice %43 {offsets = [0, 16], sizes = [8, 8], strides = [1, 1]} : vector<8x32xf32> to vector<8x8xf32>
    %61 = vector.extract_strided_slice %43 {offsets = [0, 24], sizes = [8, 8], strides = [1, 1]} : vector<8x32xf32> to vector<8x8xf32>
    %62 = vector.shape_cast %58 : vector<8x8xf32> to vector<1x8x8xf32>
    %63 = vector.shape_cast %59 : vector<8x8xf32> to vector<1x8x8xf32>
    %64 = vector.shape_cast %60 : vector<8x8xf32> to vector<1x8x8xf32>
    %65 = vector.shape_cast %61 : vector<8x8xf32> to vector<1x8x8xf32>
    %66 = tpu.concatenate %62, %63, %64, %65 in 0 : vector<1x8x8xf32>, vector<1x8x8xf32>, vector<1x8x8xf32>, vector<1x8x8xf32> -> vector<4x8x8xf32>
    %67 = arith.truncf %66 : vector<4x8x8xf32> to vector<4x8x8xbf16>
    %68 = vector.extract_strided_slice %47 {offsets = [0, 0], sizes = [8, 8], strides = [1, 1]} : vector<8x32xf32> to vector<8x8xf32>
    %69 = vector.extract_strided_slice %47 {offsets = [0, 8], sizes = [8, 8], strides = [1, 1]} : vector<8x32xf32> to vector<8x8xf32>
    %70 = vector.extract_strided_slice %47 {offsets = [0, 16], sizes = [8, 8], strides = [1, 1]} : vector<8x32xf32> to vector<8x8xf32>
    %71 = vector.extract_strided_slice %47 {offsets = [0, 24], sizes = [8, 8], strides = [1, 1]} : vector<8x32xf32> to vector<8x8xf32>
    %72 = vector.shape_cast %68 : vector<8x8xf32> to vector<1x8x8xf32>
    %73 = vector.shape_cast %69 : vector<8x8xf32> to vector<1x8x8xf32>
    %74 = vector.shape_cast %70 : vector<8x8xf32> to vector<1x8x8xf32>
    %75 = vector.shape_cast %71 : vector<8x8xf32> to vector<1x8x8xf32>
    %76 = tpu.concatenate %72, %73, %74, %75 in 0 : vector<1x8x8xf32>, vector<1x8x8xf32>, vector<1x8x8xf32>, vector<1x8x8xf32> -> vector<4x8x8xf32>
    %77 = arith.truncf %76 : vector<4x8x8xf32> to vector<4x8x8xbf16>
    "tpu.trace_start"() <{level = 10 : i32, message = "hnd,hmd->hnm"}> : () -> ()
    %cst_13 = arith.constant dense<0.000000e+00> : vector<4x8x8xf32>
    %78 = tpu.matmul %57, %67, %cst_13 {dimension_numbers = #tpu.dot_dimension_numbers<[2], [2], [1], [1], [0, 0, 0, 1, 1, 1], [0], [0]>} : vector<4x8x8xbf16>, vector<4x8x8xbf16>, vector<4x8x8xf32> -> vector<4x8x8xf32>
    "tpu.trace_stop"() : () -> ()
    %cst_14 = arith.constant 0.353553385 : f32
    %79 = vector.broadcast %cst_14 : f32 to vector<4x8x8xf32>
    %80 = arith.mulf %78, %79 : vector<4x8x8xf32>
    %c0_15 = arith.constant 0 : index
    %c0_16 = arith.constant 0 : index
    %c0_17 = arith.constant 0 : index
    %c0_18 = arith.constant 0 : index
    %81 = vector.load %arg8[%c0_15, %c0_16, %c0_17, %c0_18] : memref<1x4x8x8xf32, #tpu.memory_space<vmem>>, vector<1x4x8x8xf32>
    %82 = vector.shape_cast %81 : vector<1x4x8x8xf32> to vector<4x8x8xf32>
    %83 = arith.addf %80, %82 : vector<4x8x8xf32>
    %cst_19 = arith.constant dense<0xFF800000> : vector<4x8xf32>
    %84 = vector.multi_reduction <maximumf>, %83, %cst_19 [2] : vector<4x8x8xf32> to vector<4x8xf32>
    %85 = vector.shape_cast %84 : vector<4x8xf32> to vector<4x8x1xf32>
    %86 = vector.broadcast %85 : vector<4x8x1xf32> to vector<4x8x8xf32>
    %87 = arith.subf %83, %86 : vector<4x8x8xf32>
    %88 = math.exp %87 : vector<4x8x8xf32>
    %cst_20 = arith.constant dense<0.000000e+00> : vector<4x8xf32>
    %89 = vector.multi_reduction <add>, %88, %cst_20 [2] : vector<4x8x8xf32> to vector<4x8xf32>
    %90 = vector.shape_cast %89 : vector<4x8xf32> to vector<4x8x1xf32>
    %91 = tpu.reciprocal %90 {approx = true} : vector<4x8x1xf32> -> vector<4x8x1xf32>
    %92 = vector.broadcast %91 : vector<4x8x1xf32> to vector<4x8x8xf32>
    %93 = arith.mulf %88, %92 : vector<4x8x8xf32>
    %94 = arith.truncf %93 : vector<4x8x8xf32> to vector<4x8x8xbf16>
    "tpu.trace_start"() <{level = 10 : i32, message = "hnm,hmd->hnd"}> : () -> ()
    %cst_21 = arith.constant dense<0.000000e+00> : vector<4x8x8xf32>
    %95 = tpu.matmul %94, %77, %cst_21 {dimension_numbers = #tpu.dot_dimension_numbers<[2], [1], [1], [2], [0, 0, 0, 1, 1, 2], [0], [0]>} : vector<4x8x8xbf16>, vector<4x8x8xbf16>, vector<4x8x8xf32> -> vector<4x8x8xf32>
    "tpu.trace_stop"() : () -> ()
    %96 = vector.extract_strided_slice %95 {offsets = [0, 0, 0], sizes = [1, 8, 8], strides = [1, 1, 1]} : vector<4x8x8xf32> to vector<1x8x8xf32>
    %97 = vector.shape_cast %96 : vector<1x8x8xf32> to vector<8x8xf32>
    %98 = vector.extract_strided_slice %95 {offsets = [1, 0, 0], sizes = [1, 8, 8], strides = [1, 1, 1]} : vector<4x8x8xf32> to vector<1x8x8xf32>
    %99 = vector.shape_cast %98 : vector<1x8x8xf32> to vector<8x8xf32>
    %100 = vector.extract_strided_slice %95 {offsets = [2, 0, 0], sizes = [1, 8, 8], strides = [1, 1, 1]} : vector<4x8x8xf32> to vector<1x8x8xf32>
    %101 = vector.shape_cast %100 : vector<1x8x8xf32> to vector<8x8xf32>
    %102 = vector.extract_strided_slice %95 {offsets = [3, 0, 0], sizes = [1, 8, 8], strides = [1, 1, 1]} : vector<4x8x8xf32> to vector<1x8x8xf32>
    %103 = vector.shape_cast %102 : vector<1x8x8xf32> to vector<8x8xf32>
    %104 = tpu.concatenate %97, %99, %101, %103 in 1 : vector<8x8xf32>, vector<8x8xf32>, vector<8x8xf32>, vector<8x8xf32> -> vector<8x32xf32>
    %105 = arith.truncf %104 : vector<8x32xf32> to vector<8x32xbf16>
    %c0_22 = arith.constant 0 : index
    %c0_23 = arith.constant 0 : index
    %c0_24 = arith.constant 0 : index
    %106 = vector.load %arg5[%c0_22, %c0_23, %c0_24] : memref<1x32x32xbf16, #tpu.memory_space<vmem>>, vector<1x32x32xbf16>
    %107 = vector.shape_cast %106 : vector<1x32x32xbf16> to vector<32x32xbf16>
    %cst_25 = arith.constant dense<0.000000e+00> : vector<8x32xf32>
    %108 = tpu.matmul %105, %107, %cst_25 {dimension_numbers = #tpu.dot_dimension_numbers<[1], [0], [0], [1], [0, 0, 1, 1], [], []>} : vector<8x32xbf16>, vector<32x32xbf16>, vector<8x32xf32> -> vector<8x32xf32>
    %109 = vector.extract_strided_slice %7 {offsets = [5, 0], sizes = [1, 32], strides = [1, 1]} : vector<10x32xf32> to vector<1x32xf32>
    %110 = vector.broadcast %109 : vector<1x32xf32> to vector<8x32xf32>
    %111 = arith.addf %108, %110 : vector<8x32xf32>
    %112 = arith.addf %5, %111 : vector<8x32xf32>
    %113 = vector.extract_strided_slice %7 {offsets = [6, 0], sizes = [1, 32], strides = [1, 1]} : vector<10x32xf32> to vector<1x32xf32>
    %114 = vector.extract_strided_slice %7 {offsets = [7, 0], sizes = [1, 32], strides = [1, 1]} : vector<10x32xf32> to vector<1x32xf32>
    %cst_26 = arith.constant dense<0.000000e+00> : vector<8xf32>
    %115 = vector.multi_reduction <add>, %112, %cst_26 [1] : vector<8x32xf32> to vector<8xf32>
    %116 = vector.shape_cast %115 : vector<8xf32> to vector<8x1xf32>
    %cst_27 = arith.constant 3.200000e+01 : f32
    %117 = vector.broadcast %cst_27 : f32 to vector<8x1xf32>
    %118 = arith.divf %116, %117 : vector<8x1xf32>
    %119 = vector.broadcast %118 : vector<8x1xf32> to vector<8x32xf32>
    %120 = arith.subf %112, %119 : vector<8x32xf32>
    %121 = arith.mulf %120, %120 : vector<8x32xf32>
    %cst_28 = arith.constant dense<0.000000e+00> : vector<8xf32>
    %122 = vector.multi_reduction <add>, %121, %cst_28 [1] : vector<8x32xf32> to vector<8xf32>
    %123 = vector.shape_cast %122 : vector<8xf32> to vector<8x1xf32>
    %cst_29 = arith.constant 3.200000e+01 : f32
    %124 = vector.broadcast %cst_29 : f32 to vector<8x1xf32>
    %125 = arith.divf %123, %124 : vector<8x1xf32>
    %126 = vector.broadcast %118 : vector<8x1xf32> to vector<8x32xf32>
    %127 = arith.subf %112, %126 : vector<8x32xf32>
    %cst_30 = arith.constant 9.99999974E-6 : f32
    %128 = vector.broadcast %cst_30 : f32 to vector<8x1xf32>
    %129 = arith.addf %125, %128 : vector<8x1xf32>
    %130 = math.rsqrt %129 : vector<8x1xf32>
    %131 = vector.broadcast %130 : vector<8x1xf32> to vector<8x32xf32>
    %132 = arith.mulf %127, %131 : vector<8x32xf32>
    %133 = vector.broadcast %113 : vector<1x32xf32> to vector<8x32xf32>
    %134 = arith.mulf %132, %133 : vector<8x32xf32>
    %135 = vector.broadcast %114 : vector<1x32xf32> to vector<8x32xf32>
    %136 = arith.addf %134, %135 : vector<8x32xf32>
    %137 = arith.truncf %136 : vector<8x32xf32> to vector<8x32xbf16>
    %c0_31 = arith.constant 0 : index
    %c0_32 = arith.constant 0 : index
    %c0_33 = arith.constant 0 : index
    %138 = vector.load %arg6[%c0_31, %c0_32, %c0_33] : memref<1x32x32xbf16, #tpu.memory_space<vmem>>, vector<1x32x32xbf16>
    %139 = vector.shape_cast %138 : vector<1x32x32xbf16> to vector<32x32xbf16>
    %cst_34 = arith.constant dense<0.000000e+00> : vector<8x32xf32>
    %140 = tpu.matmul %137, %139, %cst_34 {dimension_numbers = #tpu.dot_dimension_numbers<[1], [0], [0], [1], [0, 0, 1, 1], [], []>} : vector<8x32xbf16>, vector<32x32xbf16>, vector<8x32xf32> -> vector<8x32xf32>
    %141 = vector.extract_strided_slice %7 {offsets = [8, 0], sizes = [1, 32], strides = [1, 1]} : vector<10x32xf32> to vector<1x32xf32>
    %142 = vector.broadcast %141 : vector<1x32xf32> to vector<8x32xf32>
    %143 = arith.addf %140, %142 : vector<8x32xf32>
    %144 = arith.mulf %143, %143 : vector<8x32xf32>
    %145 = arith.mulf %143, %144 : vector<8x32xf32>
    %cst_35 = arith.constant 4.471500e-02 : f32
    %146 = vector.broadcast %cst_35 : f32 to vector<8x32xf32>
    %147 = arith.mulf %146, %145 : vector<8x32xf32>
    %148 = arith.addf %143, %147 : vector<8x32xf32>
    %cst_36 = arith.constant 0.797884583 : f32
    %149 = vector.broadcast %cst_36 : f32 to vector<8x32xf32>
    %150 = arith.mulf %149, %148 : vector<8x32xf32>
    %151 = math.tanh %150 : vector<8x32xf32>
    %cst_37 = arith.constant 1.000000e+00 : f32
    %152 = vector.broadcast %cst_37 : f32 to vector<8x32xf32>
    %153 = arith.addf %152, %151 : vector<8x32xf32>
    %cst_38 = arith.constant 5.000000e-01 : f32
    %154 = vector.broadcast %cst_38 : f32 to vector<8x32xf32>
    %155 = arith.mulf %154, %153 : vector<8x32xf32>
    %156 = arith.mulf %143, %155 : vector<8x32xf32>
    %157 = arith.truncf %156 : vector<8x32xf32> to vector<8x32xbf16>
    %c0_39 = arith.constant 0 : index
    %c0_40 = arith.constant 0 : index
    %c0_41 = arith.constant 0 : index
    %158 = vector.load %arg7[%c0_39, %c0_40, %c0_41] : memref<1x32x32xbf16, #tpu.memory_space<vmem>>, vector<1x32x32xbf16>
    %159 = vector.shape_cast %158 : vector<1x32x32xbf16> to vector<32x32xbf16>
    %cst_42 = arith.constant dense<0.000000e+00> : vector<8x32xf32>
    %160 = tpu.matmul %157, %159, %cst_42 {dimension_numbers = #tpu.dot_dimension_numbers<[1], [0], [0], [1], [0, 0, 1, 1], [], []>} : vector<8x32xbf16>, vector<32x32xbf16>, vector<8x32xf32> -> vector<8x32xf32>
    %161 = vector.extract_strided_slice %7 {offsets = [9, 0], sizes = [1, 32], strides = [1, 1]} : vector<10x32xf32> to vector<1x32xf32>
    %162 = vector.broadcast %161 : vector<1x32xf32> to vector<8x32xf32>
    %163 = arith.addf %160, %162 : vector<8x32xf32>
    %164 = arith.addf %112, %163 : vector<8x32xf32>
    %165 = arith.index_cast %arg2 : i32 to index
    %c0_43 = arith.constant 0 : index
    %c0_44 = arith.constant 0 : index
    %166 = vector.load %arg13[%165, %c0_43, %c0_44] : memref<1x8x32xf32, #tpu.memory_space<vmem>>, vector<1x8x32xf32>
    %167 = vector.shape_cast %166 : vector<1x8x32xf32> to vector<8x32xf32>
    %168 = vector.shape_cast %164 : vector<8x32xf32> to vector<1x8x32xf32>
    tpu.vector_store %arg13[%165, %c0_43, %c0_44], %168 {strides = array<i32>} : memref<1x8x32xf32, #tpu.memory_space<vmem>>, vector<1x8x32xf32>,
    %c2_i32 = arith.constant 2 : i32
    %169 = arith.cmpi eq, %arg1, %c2_i32 : i32
    %170 = arith.extui %169 : i1 to i32
    %c0_i32_45 = arith.constant 0 : i32
    %171 = arith.cmpi ne, %170, %c0_i32_45 : i32
    scf.if %171 {
      %172 = vector.extract_strided_slice %164 {offsets = [0, 0], sizes = [1, 32], strides = [1, 1]} : vector<8x32xf32> to vector<1x32xf32>
      %c0_46 = arith.constant 0 : index
      %c0_47 = arith.constant 0 : index
      %173 = vector.load %arg10[%c0_46, %c0_47] : memref<32x8xf32, #tpu.memory_space<vmem>>, vector<32x8xf32>
      %cst_48 = arith.constant dense<0.000000e+00> : vector<1x8xf32>
      %174 = tpu.matmul %172, %173, %cst_48 {dimension_numbers = #tpu.dot_dimension_numbers<[1], [0], [0], [1], [0, 0, 1, 1], [], []>} : vector<1x32xf32>, vector<32x8xf32>, vector<1x8xf32> -> vector<1x8xf32>
      %c0_49 = arith.constant 0 : index
      %c0_50 = arith.constant 0 : index
      %175 = vector.load %arg11[%c0_49, %c0_50] : memref<1x8xf32, #tpu.memory_space<vmem>>, vector<1x8xf32>
      %176 = arith.addf %174, %175 : vector<1x8xf32>
      %cst_51 = arith.constant dense<0xFF800000> : vector<1xf32>
      %177 = vector.multi_reduction <maximumf>, %176, %cst_51 [1] : vector<1x8xf32> to vector<1xf32>
      %178 = vector.shape_cast %177 : vector<1xf32> to vector<1x1xf32>
      %179 = vector.broadcast %178 : vector<1x1xf32> to vector<1x8xf32>
      %180 = arith.subf %176, %179 : vector<1x8xf32>
      %181 = math.exp %180 : vector<1x8xf32>
      %cst_52 = arith.constant dense<0.000000e+00> : vector<1xf32>
      %182 = vector.multi_reduction <add>, %181, %cst_52 [1] : vector<1x8xf32> to vector<1xf32>
      %183 = vector.shape_cast %182 : vector<1xf32> to vector<1x1xf32>
      %184 = vector.broadcast %183 : vector<1x1xf32> to vector<1x8xf32>
      %185 = arith.divf %181, %184 : vector<1x8xf32>
      %c0_53 = arith.constant 0 : index
      %c0_54 = arith.constant 0 : index
      %c0_55 = arith.constant 0 : index
      %186 = vector.load %arg12[%c0_53, %c0_54, %c0_55] : memref<1x1x8xf32, #tpu.memory_space<vmem>>, vector<1x1x8xf32>
      %187 = vector.shape_cast %186 : vector<1x1x8xf32> to vector<1x8xf32>
      %188 = vector.shape_cast %185 : vector<1x8xf32> to vector<1x1x8xf32>
      tpu.vector_store %arg12[%c0_53, %c0_54, %c0_55], %188 {strides = array<i32>} : memref<1x1x8xf32, #tpu.memory_space<vmem>>, vector<1x1x8xf32>,
    } else {
    }
    return
  }
  func.func @transform_0(%arg0: i32, %arg1: i32, %arg2: i32) -> (i32, i32, i32) {
    %c1_i32 = arith.constant 1 : i32
    %0 = arith.muli %arg0, %c1_i32 : i32
    %1 = arith.addi %0, %arg2 : i32
    %c0_i32 = arith.constant 0 : i32
    %c0_i32_0 = arith.constant 0 : i32
    %c0_i32_1 = arith.constant 0 : i32
    return %1, %c0_i32, %c0_i32_0 : i32, i32, i32
  }
  func.func @transform_1(%arg0: i32, %arg1: i32, %arg2: i32) -> (i32, i32, i32) {
    %c0_i32 = arith.constant 0 : i32
    %c0_i32_0 = arith.constant 0 : i32
    %c0_i32_1 = arith.constant 0 : i32
    return %arg1, %c0_i32, %c0_i32_0 : i32, i32, i32
  }
  func.func @transform_2(%arg0: i32, %arg1: i32, %arg2: i32) -> (i32, i32, i32) {
    %c0_i32 = arith.constant 0 : i32
    %c0_i32_0 = arith.constant 0 : i32
    %c0_i32_1 = arith.constant 0 : i32
    return %arg1, %c0_i32, %c0_i32_0 : i32, i32, i32
  }
  func.func @transform_3(%arg0: i32, %arg1: i32, %arg2: i32) -> (i32, i32, i32) {
    %c0_i32 = arith.constant 0 : i32
    %c0_i32_0 = arith.constant 0 : i32
    %c0_i32_1 = arith.constant 0 : i32
    return %arg1, %c0_i32, %c0_i32_0 : i32, i32, i32
  }
  func.func @transform_4(%arg0: i32, %arg1: i32, %arg2: i32) -> (i32, i32, i32) {
    %c0_i32 = arith.constant 0 : i32
    %c0_i32_0 = arith.constant 0 : i32
    %c0_i32_1 = arith.constant 0 : i32
    return %arg1, %c0_i32, %c0_i32_0 : i32, i32, i32
  }
  func.func @transform_5(%arg0: i32, %arg1: i32, %arg2: i32) -> (i32, i32, i32, i32) {
    %c0_i32 = arith.constant 0 : i32
    %c0_i32_0 = arith.constant 0 : i32
    %c0_i32_1 = arith.constant 0 : i32
    %c0_i32_2 = arith.constant 0 : i32
    return %arg1, %c0_i32, %c0_i32_0, %c0_i32_1 : i32, i32, i32, i32
  }
  func.func @transform_6(%arg0: i32, %arg1: i32, %arg2: i32) -> (i32, i32, i32) {
    %c0_i32 = arith.constant 0 : i32
    %c0_i32_0 = arith.constant 0 : i32
    %c0_i32_1 = arith.constant 0 : i32
    return %arg1, %c0_i32, %c0_i32_0 : i32, i32, i32
  }
  func.func @transform_7(%arg0: i32, %arg1: i32, %arg2: i32) -> (i32, i32) {
    %c0_i32 = arith.constant 0 : i32
    %c0_i32_0 = arith.constant 0 : i32
    %c0_i32_1 = arith.constant 0 : i32
    return %c0_i32, %c0_i32_0 : i32, i32
  }
  func.func @transform_8(%arg0: i32, %arg1: i32, %arg2: i32) -> (i32, i32) {
    %c0_i32 = arith.constant 0 : i32
    %c0_i32_0 = arith.constant 0 : i32
    %c0_i32_1 = arith.constant 0 : i32
    return %c0_i32, %c0_i32_0 : i32, i32
  }
  func.func @transform_9(%arg0: i32, %arg1: i32, %arg2: i32) -> (i32, i32, i32) {
    %c1_i32 = arith.constant 1 : i32
    %0 = arith.muli %arg0, %c1_i32 : i32
    %1 = arith.addi %0, %arg2 : i32
    %c0_i32 = arith.constant 0 : i32
    %c0_i32_0 = arith.constant 0 : i32
    %c0_i32_1 = arith.constant 0 : i32
    return %1, %c0_i32, %c0_i32_0 : i32, i32, i32
  }
}

</mosaic_0001>

<bundles_post_ra>
// kernel: eeg_transformer_forward.2
= control target key start
LH: loop header
LB: loop body
LE: loop exit
PB: predicated region body
PF: predicated region fallthrough
CT: control target
= control target key end

     0   :  { %s710_s24 = smov 0   ;;  %s765_s0 = inlined_call_operand.vmem [shape: f32[2,32,32], index: 0, kind: input, shape index: {}]   ;;  %s766_s1 = inlined_call_operand.vmem [shape: bf16[32,8], index: 1, kind: input, shape index: {}]   ;;  %s767_s2 = inlined_call_operand.vmem [shape: bf16[64,32], index: 2, kind: input, shape index: {}]   ;;  %s768_s3 = inlined_call_operand.vmem [shape: f32[1,32], index: 3, kind: input, shape index: {}]   ;;  %s769_s4 = inlined_call_operand.vmem [shape: f32[1,32], index: 4, kind: input, shape index: {}]   ;;  %s770_s5 = inlined_call_operand.vmem [shape: f32[1,32], index: 5, kind: input, shape index: {}]   ;;  %s771_s6 = inlined_call_operand.vmem [shape: f32[1,32], index: 6, kind: input, shape index: {}]   ;;  %s772_s7 = inlined_call_operand.vmem [shape: f32[2,8,32], index: 7, kind: output, shape index: {}]  }
   0x1 LB: > { %s576_s25 = sadd.s32 4294967295, %s659_s24   ;;  %p580_p0 = scmp.ge.s32.totalorder %s659_s24, 1  ;;  %s659_s24 = sphi %s710_s24, %s17_s24  }
   0x2   : > { %p237_p1 = scmp.lt.s32.totalorder %s659_s24, 3 }
   0x4   : > { %p238_p2 = pnand %p580_p0, %p237_p1 }
   0x5   : > { %p268_p3 = scmp.lt.s32.totalorder (!%p238_p2), %s576_s25, 1  ;;  %s662_s17 = smov (!%p238_p2), 32  }
   0x6   : > { %241 = sbr.rel (%p238_p2) target bundleno = 857 (0x359), region = 48  ;;  %s663_s20 = smov (!%p238_p2), 8  }
   0x7   : > { %s665_s21 = smov (!%p238_p2), 16   ;;  %s666_s22 = smov (!%p238_p2), 24  }
   0x8   : > { %s667_s23 = smov (!%p238_p2), 40   ;;  %s668_s26 = smov (!%p238_p2), 48  }
   0x9   : > { %s669_s27 = smov (!%p238_p2), 56  }
   0xb   : > { %v645_v0 = vld [vmem:[%s766_s1 + $0x8] sm:$0xff]   ;;  %v646_v1 = vld [vmem:[%s766_s1] sm:$0xff]   ;;  %s774_s25 = smov (!%p268_p3, %s576_s25), 1  ;;  %vm300_vm0 = vcmask 261120   ;;  %v661_v8 = vmov 0.0   ;;  %v647_v9 = vld [vmem:[%s767_s2 + $0x18] sm:$0xff]  }
   0xc   : > { %608 = vmatprep.subr.bf16.mxu0 %v645_v0  ;;  %s598_s30 = sshll.u32 %s774_s25, 5  ;;  %616 = vmatprep.subr.bf16.mxu1 %v661_v8  ;;  %v648_v10 = vld [vmem:[%s767_s2 + $0x10] sm:$0xff]   ;;  %v649_v11 = vld [vmem:[%s767_s2 + $0x8] sm:$0xff]   ;;  %v650_v14 = vld [vmem:[%s767_s2] sm:$0xff]   ;;  %vm664_vm1 = vmmov 0   ;;  %vm385_vm2 = vcmask 64512  }
   0xd   : > { %609 = vmatpush3.bf16.msra.mxu0 %v645_v0  ;;  %s272_s10 = scalar_lea.vmem %s765_s0, %s598_s30  ;;  %617 = vmatpush3.bf16.msra.mxu1 %v647_v9  ;;  %vm387_vm3 = vcmask 130048   ;;  %vm389_vm4 = vcmask 195584   ;;  %vm392_vm5 = vcmask 326656   ;;  %vm394_vm6 = vcmask 392192   ;;  %v588_v36 = vld [vmem:[%s768_s3] ss:$0 sm:$0xff] }
   0xe   : > { %610 = vmatprep.subr.bf16.mxu0 %v646_v1  ;;  %v278_v2 = vld [vmem:[%s272_s10] sm:$0xff]  ;;  %v279_v3 = vld [vmem:[%s272_s10 + $0x8] sm:$0xff]  ;;  %v280_v4 = vld [vmem:[%s272_s10 + $0x10] sm:$0xff]  ;;  %618 = vmatprep.subr.bf16.mxu1 %v661_v8  ;;  %vm396_vm7 = vcmask 457728   ;;  %vm438_vm8 = vcmask 523264   ;;  %vm485_vm9 = vcmask 257024  }
   0xf   : > { %v282_v5 = vpack.c.bf16 %v279_v3, %v278_v2  ;;  %v281_v6 = vld [vmem:[%s272_s10 + $0x18] sm:$0xff]  ;;  %624 = vmatprep.mubr.msk.bf16.mxu1 %vm664_vm1, %v661_v8  ;;  %v594_v53 = vld [vmem:[%s769_s4] ss:$0 sm:$0xff]  ;;  %s583_s11 = sshll.u32 %s774_s25, 3  ;;  %vm518_vm10 = vcmask 1040384   ;;  %vm520_vm11 = vcmask 1044480  }
  0x10   : > { %v283_v7 = vpack.c.bf16 %v281_v6, %v280_v4  ;;  %v595_v55 = vld [vmem:[%s770_s5] ss:$0 sm:$0xff]  ;;  %s276_s16 = scalar_lea.vmem %s772_s7, %s583_s11 }
  0x11   : > { %611 = vmatpush3.bf16.msra.mxu0 %v646_v1  ;;  %612 = vmatprep.mubr.msk.bf16.mxu0 %vm300_vm0, %v282_v5  ;;  %v514_v58 = vld [vmem:[%s771_s6] sm:$0x1] }
  0x12   : > { %619 = vmatpush3.bf16.msra.mxu1 %v648_v10 }
  0x13   : > { %620 = vmatprep.subr.bf16.mxu1 %v661_v8 }
  0x14   : > { %613 = vmatmul.mubr.msk.bf16.vlgmr.msra.gmra.mxu0 %vm300_vm0, %v283_v7 }
  0x16   : > { %621 = vmatpush3.bf16.msra.mxu1 %v649_v11 }
  0x17   : > { %622 = vmatprep.subr.bf16.mxu1 %v661_v8 }
  0x1a   : > { %623 = vmatpush3.bf16.msra.mxu1 %v650_v14 }
  0xd4   : > { %v614_v12 = vpop.f32.mrf.mxu0 }
  0xd5   : > { %370 = vrot.lane.b32.xlu1 %v614_v12, %s662_s17  ;;  %v373_v19 = vrot.slane %v614_v12, 4 }
  0xd6   : > { %v341_v13 = vpop.f32.mrf.mxu0 }
  0xd7   : > { %v357_v15 = vrot.slane %v341_v13, 4 }
  0xd8   : > { %v615_v16 = vpop.f32.mrf.mxu0 }
  0xd9   : > { %358 = vrot.lane.b32.xlu0 %v357_v15, %s663_s20  ;;  %v381_v20 = vrot.slane %v615_v16, 4 }
  0xda   : > { %v344_v17 = vpop.f32.mrf.mxu0 }
  0xdb   : > { %v365_v18 = vrot.slane %v344_v17, 4 }
  0xdd   : > { %362 = vrot.lane.b32.xlu0 %v344_v17, %s665_s21  ;;  %366 = vrot.lane.b32.xlu1 %v365_v18, %s666_s22 }
  0xe1   : > { %374 = vrot.lane.b32.xlu0 %v373_v19, %s667_s23  ;;  %378 = vrot.lane.b32.xlu1 %v615_v16, %s668_s26 }
  0xe5   : > { %382 = vrot.lane.b32.xlu0 %v381_v20, %s669_s27 }
 0x147   : > { %v371_v21 = vpop.permute.xlu1 %370 }
 0x14b   : > { %v359_v22 = vpop.permute.xlu0 %358 }
 0x14c   : > { %v386_v23 = vsel %vm385_vm2, %v341_v13, %v359_v22 }
 0x14f   : > { %v363_v24 = vpop.permute.xlu0 %362  ;;  %v367_v25 = vpop.permute.xlu1 %366 }
 0x150   : > { %v388_v26 = vsel %vm387_vm3, %v386_v23, %v363_v24 }
 0x151   : > { %v390_v27 = vsel %vm389_vm4, %v388_v26, %v367_v25 }
 0x152   : > { %v391_v28 = vsel %vm300_vm0, %v390_v27, %v371_v21 }
 0x153   : > { %v375_v29 = vpop.permute.xlu0 %374  ;;  %v379_v31 = vpop.permute.xlu1 %378 }
 0x154   : > { %v393_v30 = vsel %vm392_vm5, %v391_v28, %v375_v29 }
 0x155   : > { %v395_v32 = vsel %vm394_vm6, %v393_v30, %v379_v31 }
 0x157   : > { %v383_v33 = vpop.permute.xlu0 %382 }
 0x158   : > { %v397_v34 = vsel %vm396_vm7, %v395_v32, %v383_v33 }
 0x159   : > { %v398_v35 = vpack.c.bf16 %v397_v34, %v397_v34 }
 0x15b   : > { %625 = vmatmul.mubr.msk.bf16.vlgmr.msra.gmra.mxu1 %vm438_vm8, %v398_v35 }
 0x21b   : > { %v476_v37 = vpop.f32.mrf.mxu1 }
 0x21c   : > { %v477_v38 = vadd.f32 %v588_v36, %v476_v37 }
 0x21d   : > { %v626_v39 = vpop.f32.mrf.mxu1 }
 0x21e   : > { %v482_v40 = vmax.f32 %v477_v38, 0.0 }
 0x21f   : > { %v479_v41 = vpop.f32.mrf.mxu1 }
 0x220   : > { %v486_v42 = vsel %vm485_vm9, %v482_v40, 0.0 }
 0x221   : > { %487 = vadd.xlane.f32.xlu1 %v486_v42  ;;  %v627_v43 = vpop.f32.mrf.mxu1 }
 0x2aa   : > { %v488_v44 = vpop.xlane.xlu1 %487 }
 0x2ab   : > { %v490_v45 = vmul.f32 0.03125, %v488_v44 }
 0x2ad   : > { %v491_v46 = vsub.f32 %v482_v40, %v490_v45 }
 0x2af   : > { %v492_v47 = vmul.f32 %v491_v46, %v491_v46 }
 0x2b1   : > { %v493_v48 = vsel %vm485_vm9, %v492_v47, 0.0 }
 0x2b2   : > { %494 = vadd.xlane.f32.xlu0 %v493_v48 }
 0x33b   : > { %v495_v49 = vpop.xlane.xlu0 %494 }
 0x33c   : > { %v496_v50 = vmul.f32 0.03125, %v495_v49 }
 0x33e   : > { %v497_v51 = vadd.f32 1e-05, %v496_v50 }
 0x340   : > { %651 = vrsqrt.f32 %v497_v51 }
 0x34d   : > { %v652_v52 = vpop.eup %651 }
 0x34e   : > { %v499_v54 = vmul.f32 %v652_v52, %v491_v46 }
 0x350   : > { %v506_v56 = vmul.f32 %v594_v53, %v499_v54 }
 0x352   : > { %v513_v57 = vadd.f32 %v595_v55, %v506_v56 }
 0x354   : > { %v516_v59 = vrot.slane %v513_v57, 7 }
 0x356   : > { %v519_v60 = vsel %vm518_vm10, %v514_v58, %v516_v59 }
 0x357   : > { %v521_v61 = vsel %vm520_vm11, %v519_v60, 0.0 }
 0x358   : > { %522 = vst.msk [vmem:[%s276_s16] sm:$0xff] %vm300_vm0, %v521_v61 }
 0x359 PF: > { %s17_s24 = sadd.s32 1, %s659_s24  }
 0x35a   : > { %p14_p4 = scmp.ge.s32.totalorder %s17_s24, 4  }
 0x35c   :  { %16 = sbr.rel (!%p14_p4) target bundleno = 1 (0x1), region = 78 }

// kernel: eeg_transformer_forward.3
= control target key start
LH: loop header
LB: loop body
LE: loop exit
PB: predicated region body
PF: predicated region fallthrough
CT: control target
= control target key end

     0   :  { %s2360_s0 = inlined_call_operand.vmem [shape: f32[2,8,32], index: 0, kind: input, shape index: {}]   ;;  %s2361_s1 = inlined_call_operand.vmem [shape: bf16[3,32,96], index: 1, kind: input, shape index: {}]   ;;  %s2362_s2 = inlined_call_operand.vmem [shape: bf16[3,32,32], index: 2, kind: input, shape index: {}]   ;;  %s2363_s3 = inlined_call_operand.vmem [shape: bf16[3,32,32], index: 3, kind: input, shape index: {}]   ;;  %s2364_s4 = inlined_call_operand.vmem [shape: bf16[3,32,32], index: 4, kind: input, shape index: {}]   ;;  %s2365_s5 = inlined_call_operand.vmem [shape: f32[3,4,8,8], index: 5, kind: input, shape index: {}]   ;;  %s2366_s6 = inlined_call_operand.vmem [shape: f32[3,10,32], index: 6, kind: input, shape index: {}]   ;;  %s2367_s7 = inlined_call_operand.vmem [shape: f32[32,8], index: 7, kind: input, shape index: {}]   ;;  %s2368_s8 = inlined_call_operand.vmem [shape: f32[1,8], index: 8, kind: input, shape index: {}]   ;;  %s2369_s9 = inlined_call_operand.hbm [shape: f32[2,1,8], index: 9, kind: output, shape index: {}]  }
   0x1   :  { %2378 = sst [smem:[#allocation15_spill]] %s2360_s0 }
   0x2   :  { %2379 = sst [smem:[#allocation16_spill]] %s2361_s1 }
   0x3   :  { %14 = vsyncpa [#allocation4], 0 }
   0x4   :  { %16 = vsyncpa [#allocation4 + $0x1], 0  ;;  %s2044_s30 = smov 0   ;;  %s2046_s10 = smov 0  }
   0x5   :  { %s2048_s11 = smov 0   ;;  %s2050_s12 = smov 0  }
   0x6   :  { %s2052_s13 = smov 0   ;;  %s2054_s14 = smov 0  }
   0x7   :  { %s2056_s15 = smov 0   ;;  %s2058_s16 = smov 0  }
   0x8 LB: > { %2380 = sst [smem:[#allocation6_spill]] %s1950_s30  ;;  %s1594_s17 = sadd.s32 4294967295, %s1978_s16   ;;  %s1978_s16 = sphi %s2058_s16, %s22_s16   ;;  %s1974_s15 = sphi %s2056_s15, %s2403_s15   ;;  %s1970_s14 = sphi %s2054_s14, %s2402_s14   ;;  %s1966_s13 = sphi %s2052_s13, %s2401_s13   ;;  %s1962_s12 = sphi %s2050_s12, %s2400_s12   ;;  %s1958_s11 = sphi %s2048_s11, %s2399_s11   ;;  %s1954_s10 = sphi %s2046_s10, %s2405_s10   ;;  %s1950_s30 = sphi %s2044_s30, %s2404_s30  }
   0x9   : > { %2381 = sst [smem:[#allocation7_spill]] %s1958_s11  ;;  %s1595_s18 = sadd.s32 4294967294, %s1978_s16  }
   0xa   : > { %2382 = sst [smem:[#allocation8_spill]] %s1970_s14  ;;  %s37_s19 = sadd.s32 1, %s1970_s14 }
   0xb   : > { %2383 = sst [smem:[#allocation9_spill]] %s1974_s15  ;;  %p39_p0 = scmp.ge.s32.totalorder %s37_s19, 3 }
   0xc   : > { %2384 = sst [smem:[#allocation10_spill]] %s1978_s16  ;;  %s41_s20 = sadd.s32 1, %s1974_s15 }
   0xd   : > { %p286_p1 = scmp.ne.s32.totalorder %s1958_s11, %s1954_s10  ;;  %p287_p2 = scmp.eq.s32.totalorder %s1594_s17, 5 }
   0xe   : > { %s2407_s19 = smov (%p39_p0, %s37_s19), 0  ;;  %s2409_s20 = smov (!%p39_p0, %s41_s20), %s1974_s15 }
   0xf   : > { %2385 = sst [smem:[#allocation11_spill]] %s2407_s19  ;;  %p2093_p3 = por %p287_p2, %p286_p1 }
  0x10   : > { %p292_p4 = scmp.ne.s32.totalorder %s1954_s10, %s1950_s30  ;;  %p43_p5 = scmp.ge.s32.totalorder %s2409_s20, 2 }
  0x11   : > { %p293_p6 = scmp.eq.s32.totalorder %s1595_s18, 5  ;;  %p1598_p7 = scmp.ge.s32.totalorder %s1978_s16, 1 }
  0x12   : > { %p374_p8 = scmp.lt.s32.totalorder %s1978_s16, 7  ;;  %s2411_s20 = smov (%p43_p5, %s2409_s20), 0 }
  0x13   : > { %2387 = sst [smem:[#allocation12_spill]] %s2411_s20  ;;  %p2103_p9 = por %p293_p6, %p292_p4 }
  0x14   : > { %p375_p10 = pnand %p1598_p7, %p374_p8  ;;  %s273_s23 = ssub.s32 %s1974_s15, %s2411_s20 }
  0x15   : > { %s2388_s22 = scalar_select %p2103_p9, 1, 0 }
  0x16   : > { %s276_s24 = sadd.s32 1, %s1958_s11  ;;  %p274_p11 = scmp.eq.s32.totalorder %s273_s23, 0 }
  0x17   : > { %2389 = sst [smem:[#allocation13_spill]] %s2388_s22  ;;  %378 = sbr.rel (%p375_p10) target bundleno = 3098 (0xc1a), region = 56 }
  0x18   : > { %s2111_s25 = scalar_select %p274_p11, %s1958_s11, %s276_s24  }
  0x19   : > { %p440_p12 = scmp.lt.s32.totalorder (!%p375_p10), %s1966_s13, 1  ;;  %p445_p13 = scmp.lt.s32.totalorder (!%p375_p10), %s1962_s12, 2 }
  0x1a   : > { %2390 = sst [smem:[#allocation14_spill]] %s2111_s25  ;;  %p1612_p0 = scmp.ne.s32.totalorder (!%p375_p10), %s1962_s12, 0 }
  0x1b   : > { %s2391_s0 = sld [smem:[#allocation15_spill]] (!%p375_p10) }
  0x1c   : > { %s441_s27 = scalar_select %p440_p12, %s1966_s13, 1 }
  0x1d   : > { %s446_s28 = scalar_select %p445_p13, %s1962_s12, 2 }
  0x1e   : > { %s1599_s29 = sshll.u32 %s441_s27, 3  ;;  %s2392_s1 = sld [smem:[#allocation16_spill]] }
  0x1f   : > { %s1638_s23 = sshll.u32 %s446_s28, 4 }
  0x20   : > { %s2127_s11 = scalar_lea.vmem %s2362_s2, %s1638_s23  ;;  %s2132_s30 = scalar_lea.vmem %s2363_s3, %s1638_s23 }
  0x21   : > { %s443_s20 = scalar_lea.vmem %s2391_s0, %s1599_s29  ;;  %s2137_s17 = scalar_lea.vmem %s2364_s4, %s1638_s23 }
  0x22   : > { %s1642_s29 = sshll.u32 %s446_s28, 5  ;;  %s2142_s19 = scalar_lea.vmem %s2366_s6, %s1638_s23 }
  0x23   : > { %s2147_s25 = scalar_lea.vmem %s2365_s5, %s1642_s29  ;;  %480 = sbr.rel (%p1612_p0) target bundleno = 42 (0x2a), region = 60 }
  0x24   : > { %s449_s15 = scalar_lea.vmem %s2392_s1, %s1638_s23  ;;  %s2393_s1 = sand.u32 1, %s1954_s10  }
  0x25   : > { %s2151_s22 = scalar_lea.vmem [#allocation3], %s2393_s1 }
  0x28   : > { %v481_v0 = vld [vmem:[%s443_s20] sm:$0xff]  ;;  %vm484_vm0 = vcmask 261120  }
  0x29   : > { %485 = vst.msk [vmem:[#allocation2] sm:$0xff] %vm484_vm0, %v481_v0 }
  0x2a PF: > { %vm491_vm1 = vcmask 261120   ;;  %v1852_v8 = vld [vmem:[%s449_s15 + $0x8] sm:$0xff]   ;;  %v1980_v9 = vmov 0.0   ;;  %vm1981_vm2 = vmmov 0   ;;  %v1853_v10 = vld [vmem:[%s449_s15] sm:$0xff]   ;;  %v506_v11 = vlaneseq  ;;  %s1982_s0 = smov 32  }
  0x2b   : > { %1677 = vmatprep.subr.bf16.mxu0 %v1980_v9  ;;  %1681 = vmatprep.mubr.msk.bf16.mxu0 %vm1981_vm2, %v1980_v9  ;;  %v2172_v14 = vld [vmem:[%s2142_s19] sm:$0xff]  ;;  %s1983_s1 = smov 112   ;;  %s1984_s15 = smov 120   ;;  %vm644_vm3 = vcmask 64512   ;;  %vm904_vm4 = vcmask 1043456   ;;  %vm1108_vm5 = vcmask 130048  }
  0x2c   : > { %1678 = vmatpush3.bf16.msra.mxu0 %v1852_v8  ;;  %1685 = vmatprep.subr.bf16.mxu1 %v1980_v9  ;;  %v2168_v12 = vshrl.u32 %v506_v11, 7  ;;  %s1985_s16 = smov 104   ;;  %s1986_s20 = smov 64   ;;  %v842_v62 = vld [vmem:[%s2147_s25] sm:$0xff]  ;;  %vm1110_vm6 = vcmask 195584  }
  0x2d   : > { %1679 = vmatprep.subr.bf16.mxu0 %v1980_v9  ;;  %1687 = vmatprep.mubr.msk.bf16.mxu1 %vm1981_vm2, %v1980_v9  ;;  %s1987_s26 = smov 96   ;;  %s1988_s28 = smov 8  }
  0x2e   : > { %v583_v13 = vsub.s32 3, %v2168_v12  ;;  %v508_v19 = vsub.s32 0, %v2168_v12  ;;  %v513_v20 = vsub.s32 1, %v2168_v12  ;;  %v578_v28 = vsub.s32 2, %v2168_v12  ;;  %s1989_s23 = smov 16   ;;  %s1990_s27 = smov 24  }
  0x2f   : > { %v592_v34 = vsub.s32 4, %v2168_v12  ;;  %p1633_p1 = scmp.ne.s32.totalorder %s1962_s12, 2 }
  0x30   : > { %v2154_v1 = vld [vmem:[#allocation2] sm:$0xff]  ;;  %1680 = vmatpush3.bf16.msra.mxu0 %v1853_v10  ;;  %v584_v15 = vrot.slane %v2172_v14, %v583_v13  ;;  %v509_v21 = vrot.slane %v2172_v14, %v508_v19  ;;  %v514_v24 = vrot.slane %v2172_v14, %v513_v20  ;;  %v579_v31 = vrot.slane %v2172_v14, %v578_v28 }
  0x31   : > { %v492_v2 = vsel %vm491_vm1, %v2154_v1, 0.0  ;;  %1691 = vmatprep.subr.bf16.mxu0 %v1980_v9  ;;  %v593_v38 = vrot.slane %v2172_v14, %v592_v34 }
  0x32   : > { %493 = vadd.xlane.f32.xlu0 %v492_v2  ;;  %586 = vrot.lane.b32.xlu1 %v584_v15, %s1982_s0 }
  0xa4   : > { %v587_v29 = vpop.permute.xlu1 %586 }
  0xbb   : > { %v494_v3 = vpop.xlane.xlu0 %493 }
  0xbc   : > { %v496_v4 = vmul.f32 0.03125, %v494_v3 }
  0xbe   : > { %v497_v5 = vsub.f32 %v2154_v1, %v496_v4 }
  0xc0   : > { %v498_v6 = vmul.f32 %v497_v5, %v497_v5 }
  0xc2   : > { %v499_v7 = vsel %vm491_vm1, %v498_v6, 0.0 }
  0xc3   : > { %500 = vadd.xlane.f32.xlu0 %v499_v7  ;;  %v843_v7 = vld [vmem:[%s2147_s25 + $0x8] sm:$0xff] }
 0x14c   : > { %v501_v16 = vpop.xlane.xlu0 %500 }
 0x14d   : > { %v502_v17 = vmul.f32 0.03125, %v501_v16  ;;  %v844_v16 = vld [vmem:[%s2147_s25 + $0x10] sm:$0xff] }
 0x14f   : > { %v503_v18 = vadd.f32 1e-05, %v502_v17 }
 0x151   : > { %1860 = vrsqrt.f32 %v503_v18 }
 0x15e   : > { %v1861_v22 = vpop.eup %1860 }
 0x15f   : > { %v505_v23 = vmul.f32 %v1861_v22, %v497_v5 }
 0x161   : > { %v510_v25 = vmul.f32 %v509_v21, %v505_v23 }
 0x163   : > { %v515_v26 = vadd.f32 %v514_v24, %v510_v25 }
 0x165   : > { %v516_v27 = vpack.c.bf16 %v515_v26, %v515_v26  ;;  %v845_v26 = vld [vmem:[%s2147_s25 + $0x18] sm:$0xff] }
 0x167   : > { %1682 = vmatmul.mubr.msk.bf16.vlgmr.msra.gmra.mxu0 %vm491_vm1, %v516_v27 }
 0x168   : > { %1693 = vmatprep.mubr.msk.bf16.mxu0 %vm1981_vm2, %v1980_v9 }
 0x227   : > { %v2187_v30 = vpop.f32.mrf.mxu0 }
 0x228   : > { %v589_v32 = vadd.f32 %v587_v29, %v2187_v30  ;;  %v580_v36 = vadd.f32 %v579_v31, %v2187_v30 }
 0x229   : > { %v1683_v33 = vpop.f32.mrf.mxu0 }
 0x22a   : > { %617 = vrot.lane.b32.xlu0 %v589_v32, %s1983_s1  ;;  %614 = vrot.lane.b32.xlu1 %v589_v32, %s1984_s15  ;;  %v623_v39 = vpack.c.bf16 %v589_v32, %v589_v32  ;;  %v609_v49 = vpack.c.bf16 %v580_v36, %v580_v36 }
 0x22b   : > { %v573_v35 = vpop.f32.mrf.mxu0 }
 0x22d   : > { %v1684_v37 = vpop.f32.mrf.mxu0 }
 0x22e   : > { %620 = vrot.lane.b32.xlu1 %v589_v32, %s1985_s16  ;;  %603 = vrot.lane.b32.xlu0 %v580_v36, %s1983_s1 }
 0x232   : > { %595 = vrot.lane.b32.xlu0 %v593_v38, %s1986_s20  ;;  %600 = vrot.lane.b32.xlu1 %v580_v36, %s1984_s15 }
 0x236   : > { %642 = vrot.lane.b32.xlu1 %v623_v39, %s1987_s26 }
 0x29c   : > { %v615_v40 = vpop.permute.xlu1 %614  ;;  %v618_v42 = vpop.permute.xlu0 %617 }
 0x29d   : > { %v624_v41 = vpack.c.bf16 %v615_v40, %v615_v40  ;;  %v625_v44 = vpack.c.bf16 %v618_v42, %v618_v42 }
 0x29f   : > { %692 = vrot.lane.b32.xlu1 %v624_v41, %s1987_s26 }
 0x2a0   : > { %v621_v43 = vpop.permute.xlu1 %620  ;;  %v604_v55 = vpop.permute.xlu0 %603 }
 0x2a1   : > { %v626_v46 = vpack.c.bf16 %v621_v43, %v621_v43  ;;  %v611_v58 = vpack.c.bf16 %v604_v55, %v604_v55 }
 0x2a3   : > { %741 = vrot.lane.b32.xlu1 %v625_v44, %s1987_s26 }
 0x2a4   : > { %v601_v45 = vpop.permute.xlu1 %600 }
 0x2a5   : > { %v610_v54 = vpack.c.bf16 %v601_v45, %v601_v45 }
 0x2a7   : > { %790 = vrot.lane.b32.xlu1 %v626_v46, %s1987_s26 }
 0x2a8   : > { %v643_v47 = vpop.permute.xlu1 %642 }
 0x2a9   : > { %v649_v48 = vsel %vm644_vm3, %v643_v47, 0 }
 0x2aa   : > { %1686 = vmatpush3.bf16.xpose.msra.mxu1 %v649_v48 }
 0x2ab   : > { %606 = vrot.lane.b32.xlu1 %v580_v36, %s1985_s16  ;;  %1697 = vmatprep.subr.bf16.mxu1 %v1980_v9  ;;  %v596_v36 = vpop.permute.xlu0 %595 }
 0x2ac   : > { %v598_v37 = vadd.f32 %v596_v36, %v2187_v30  ;;  %v1855_v36 = vld [vmem:[%s2127_s11] sm:$0xff]  }
 0x2ae   : > { %v637_v38 = vpack.c.bf16 %v598_v37, %v598_v37 }
 0x2b1   : > { %1688 = vmatmul.mubr.msk.bf16.vlgmr.msra.gmra.mxu1 %vm644_vm3, %v609_v49 }
 0x2b2   : > { %1699 = vmatprep.mubr.msk.bf16.mxu1 %vm1981_vm2, %v1980_v9 }
 0x311   : > { %v693_v50 = vpop.permute.xlu1 %692 }
 0x312   : > { %v698_v51 = vsel %vm644_vm3, %v693_v50, 0 }
 0x313   : > { %1692 = vmatpush3.bf16.xpose.msra.mxu0 %v698_v51 }
 0x314   : > { %1703 = vmatprep.subr.bf16.mxu0 %v1980_v9 }
 0x315   : > { %v742_v52 = vpop.permute.xlu1 %741 }
 0x316   : > { %v747_v53 = vsel %vm644_vm3, %v742_v52, 0 }
 0x317   : > { %1698 = vmatpush3.bf16.xpose.msra.mxu1 %v747_v53 }
 0x318   : > { %1709 = vmatprep.subr.bf16.mxu1 %v1980_v9 }
 0x319   : > { %v791_v56 = vpop.permute.xlu1 %790 }
 0x31a   : > { %v796_v57 = vsel %vm644_vm3, %v791_v56, 0  ;;  %1694 = vmatmul.mubr.msk.bf16.vlgmr.msra.gmra.mxu0 %vm644_vm3, %v610_v54 }
 0x31b   : > { %1704 = vmatpush3.bf16.xpose.msra.mxu0 %v796_v57  ;;  %1705 = vmatprep.mubr.msk.bf16.mxu0 %vm1981_vm2, %v1980_v9 }
 0x31c   : > { %1715 = vmatprep.subr.bf16.mxu0 %v1980_v9 }
 0x31d   : > { %v607_v59 = vpop.permute.xlu1 %606 }
 0x31e   : > { %1700 = vmatmul.mubr.msk.bf16.vlgmr.msra.gmra.mxu1 %vm644_vm3, %v611_v58  ;;  %v612_v60 = vpack.c.bf16 %v607_v59, %v607_v59 }
 0x31f   : > { %1711 = vmatprep.mubr.msk.bf16.mxu1 %vm1981_vm2, %v1980_v9 }
 0x322   : > { %1706 = vmatmul.mubr.msk.bf16.vlgmr.msra.gmra.mxu0 %vm644_vm3, %v612_v60 }
 0x323   : > { %1717 = vmatprep.mubr.msk.bf16.mxu0 %vm1981_vm2, %v1980_v9 }
 0x371   : > { %v685_v61 = vpop.f32.mrf.mxu1 }
 0x372   : > { %v838_v63 = vmul.f32 0.35355338, %v685_v61 }
 0x373   : > { %v1689_v0 = vpop.f32.mrf.mxu1 }
 0x374   : > { %v846_v2 = vadd.f32 %v842_v62, %v838_v63 }
 0x375   : > { %v688_v3 = vpop.f32.mrf.mxu1 }
 0x376   : > { %v850_v4 = vsel %vm644_vm3, %v846_v2, -inf }
 0x377   : > { %851 = vmax.xlane.f32.xlu1 %v850_v4  ;;  %v1690_v5 = vpop.f32.mrf.mxu1 }
 0x3da   : > { %v734_v6 = vpop.f32.mrf.mxu0 }
 0x3db   : > { %v839_v8 = vmul.f32 0.35355338, %v734_v6 }
 0x3dc   : > { %v1695_v10 = vpop.f32.mrf.mxu0 }
 0x3dd   : > { %v847_v11 = vadd.f32 %v843_v7, %v839_v8 }
 0x3de   : > { %v737_v13 = vpop.f32.mrf.mxu0  ;;  %v783_v15 = vpop.f32.mrf.mxu1 }
 0x3df   : > { %v840_v17 = vmul.f32 0.35355338, %v783_v15  ;;  %v853_v18 = vsel %vm644_vm3, %v847_v11, -inf }
 0x3e0   : > { %v1701_v21 = vpop.f32.mrf.mxu1  ;;  %854 = vmax.xlane.f32.xlu0 %v853_v18  ;;  %v1696_v22 = vpop.f32.mrf.mxu0 }
 0x3e1   : > { %v848_v23 = vadd.f32 %v844_v16, %v840_v17 }
 0x3e2   : > { %v786_v24 = vpop.f32.mrf.mxu1  ;;  %v832_v25 = vpop.f32.mrf.mxu0 }
 0x3e3   : > { %v841_v27 = vmul.f32 0.35355338, %v832_v25  ;;  %v856_v28 = vsel %vm644_vm3, %v848_v23, -inf }
 0x3e4   : > { %v1702_v29 = vpop.f32.mrf.mxu1  ;;  %857 = vmax.xlane.f32.xlu0 %v856_v28  ;;  %v1707_v31 = vpop.f32.mrf.mxu0 }
 0x3e5   : > { %v849_v32 = vadd.f32 %v845_v26, %v841_v27 }
 0x3e6   : > { %v835_v33 = vpop.f32.mrf.mxu0 }
 0x3e7   : > { %v859_v34 = vsel %vm644_vm3, %v849_v32, -inf }
 0x3e8   : > { %860 = vmax.xlane.f32.xlu1 %v859_v34  ;;  %v1708_v35 = vpop.f32.mrf.mxu0 }
 0x3e9   : > { %v1854_v35 = vld [vmem:[%s2127_s11 + $0x8] sm:$0xff]  }
 0x3f9   : > { %631 = vrot.lane.b32.xlu1 %v598_v37, %s1983_s1 }
 0x3fa   : > { %628 = vrot.lane.b32.xlu0 %v598_v37, %s1984_s15 }
 0x3fd   : > { %634 = vrot.lane.b32.xlu1 %v598_v37, %s1985_s16 }
 0x400   : > { %v852_v39 = vpop.xlane.xlu1 %851 }
 0x401   : > { %v862_v40 = vsub.f32 %v846_v2, %v852_v39  ;;  %899 = vrot.lane.b32.xlu1 %v637_v38, %s1986_s20 }
 0x403   : > { %v866_v41 = vmul.f32 1.442695, %v862_v40 }
 0x405   : > { %1862 = vpow2.f32 %v866_v41 }
 0x412   : > { %v1863_v42 = vpop.eup %1862 }
 0x413   : > { %v874_v43 = vsel %vm644_vm3, %v1863_v42, 0.0 }
 0x419   : > { %875 = vadd.xlane.f32.xlu0 %v874_v43 }
 0x469   : > { %v855_v44 = vpop.xlane.xlu0 %854 }
 0x46a   : > { %v863_v45 = vsub.f32 %v847_v11, %v855_v44 }
 0x46c   : > { %v868_v30 = vmul.f32 1.442695, %v863_v45 }
 0x46d   : > { %v858_v46 = vpop.xlane.xlu0 %857 }
 0x46e   : > { %1864 = vpow2.f32 %v868_v30  ;;  %v864_v47 = vsub.f32 %v848_v23, %v858_v46 }
 0x470   : > { %v870_v48 = vmul.f32 1.442695, %v864_v47 }
 0x471   : > { %v861_v49 = vpop.xlane.xlu1 %860  ;;  %v629_v0 = vpop.permute.xlu0 %628 }
 0x472   : > { %1866 = vpow2.f32 %v870_v48  ;;  %v865_v50 = vsub.f32 %v849_v32, %v861_v49  ;;  %v638_v2 = vpack.c.bf16 %v629_v0, %v629_v0 }
 0x474   : > { %v872_v51 = vmul.f32 1.442695, %v865_v50 }
 0x475   : > { %v632_v52 = vpop.permute.xlu1 %631 }
 0x476   : > { %1868 = vpow2.f32 %v872_v51  ;;  %v639_v62 = vpack.c.bf16 %v632_v52, %v632_v52 }
 0x479   : > { %v635_v53 = vpop.permute.xlu1 %634 }
 0x47a   : > { %v640_v63 = vpack.c.bf16 %v635_v53, %v635_v53 }
 0x47b   : > { %v1865_v54 = vpop.eup %1864 }
 0x47c   : > { %v877_v55 = vsel %vm644_vm3, %v1865_v54, 0.0 }
 0x47d   : > { %878 = vadd.xlane.f32.xlu1 %v877_v55  ;;  %v900_v56 = vpop.permute.xlu1 %899  ;;  %v1119_v55 = vsub.s32 5, %v2168_v12 }
 0x47e   : > { %v906_v57 = vsel %vm904_vm4, %v900_v56, 0 }
 0x47f   : > { %v1867_v58 = vpop.eup %1866  ;;  %1710 = vmatpush3.bf16.msra.mxu1 %v906_v57  ;;  %v1120_v56 = vrot.slane %v2172_v14, %v1119_v55 }
 0x480   : > { %v880_v59 = vsel %vm644_vm3, %v1867_v58, 0.0  ;;  %1721 = vmatprep.subr.bf16.mxu1 %v1980_v9 }
 0x481   : > { %881 = vadd.xlane.f32.xlu0 %v880_v59 }
 0x483   : > { %v1869_v60 = vpop.eup %1868 }
 0x484   : > { %v883_v61 = vsel %vm644_vm3, %v1869_v60, 0.0 }
 0x485   : > { %884 = vadd.xlane.f32.xlu0 %v883_v61 }
 0x48e   : > { %998 = vrot.lane.b32.xlu1 %v639_v62, %s1986_s20 }
 0x492   : > { %1047 = vrot.lane.b32.xlu1 %v640_v63, %s1986_s20 }
 0x49b   : > { %949 = vrot.lane.b32.xlu0 %v638_v2, %s1986_s20 }
 0x4a2   : > { %v876_v3 = vpop.xlane.xlu0 %875 }
 0x4a3   : > { %1870 = vrcp.f32 %v876_v3 }
 0x4b0   : > { %v1871_v4 = vpop.eup %1870 }
 0x4b1   : > { %v890_v5 = vmul.f32 %v1871_v4, %v1863_v42 }
 0x4b3   : > { %v894_v6 = vpack.c.bf16 %v890_v5, %v890_v5 }
 0x4b5   : > { %1712 = vmatmul.mubr.msk.bf16.vlgmr.msra.gmra.mxu1 %vm644_vm3, %v894_v6  ;;  %v1856_v6 = vld [vmem:[%s2132_s30 + $0x8] sm:$0xff]  }
 0x4b6   : > { %1723 = vmatprep.mubr.msk.bf16.mxu1 %vm1981_vm2, %v1980_v9 }
 0x506   : > { %v879_v7 = vpop.xlane.xlu1 %878 }
 0x507   : > { %1872 = vrcp.f32 %v879_v7  ;;  %v1857_v7 = vld [vmem:[%s2132_s30] sm:$0xff]  }
 0x50a   : > { %v882_v8 = vpop.xlane.xlu0 %881  ;;  %v999_v10 = vpop.permute.xlu1 %998 }
 0x50b   : > { %1874 = vrcp.f32 %v882_v8  ;;  %v1004_v11 = vsel %vm904_vm4, %v999_v10, 0 }
 0x50c   : > { %1722 = vmatpush3.bf16.msra.mxu1 %v1004_v11  ;;  %v1192_v11 = vsub.s32 6, %v2168_v12 }
 0x50d   : > { %1733 = vmatprep.subr.bf16.mxu1 %v1980_v9 }
 0x50e   : > { %v885_v13 = vpop.xlane.xlu0 %884  ;;  %v1048_v21 = vpop.permute.xlu1 %1047 }
 0x50f   : > { %1876 = vrcp.f32 %v885_v13  ;;  %v1053_v24 = vsel %vm904_vm4, %v1048_v21, 0  ;;  %v1197_v13 = vsub.s32 7, %v2168_v12 }
 0x512   : > { %v950_v15 = vpop.permute.xlu0 %949 }
 0x513   : > { %v955_v16 = vsel %vm904_vm4, %v950_v15, 0  ;;  %v1193_v15 = vrot.slane %v2172_v14, %v1192_v11 }
 0x514   : > { %v1873_v17 = vpop.eup %1872  ;;  %1716 = vmatpush3.bf16.msra.mxu0 %v955_v16 }
 0x515   : > { %1727 = vmatprep.subr.bf16.mxu0 %v1980_v9  ;;  %v891_v18 = vmul.f32 %v1873_v17, %v1865_v54 }
 0x517   : > { %v895_v22 = vpack.c.bf16 %v891_v18, %v891_v18  ;;  %v1198_v18 = vrot.slane %v2172_v14, %v1197_v13 }
 0x518   : > { %v1875_v23 = vpop.eup %1874 }
 0x519   : > { %1718 = vmatmul.mubr.msk.bf16.vlgmr.msra.gmra.mxu0 %vm644_vm3, %v895_v22  ;;  %v892_v25 = vmul.f32 %v1875_v23, %v1867_v58 }
 0x51a   : > { %1728 = vmatpush3.bf16.msra.mxu0 %v1053_v24  ;;  %1729 = vmatprep.mubr.msk.bf16.mxu0 %vm1981_vm2, %v1980_v9  ;;  %v1858_v24 = vld [vmem:[%s2137_s17 + $0x8] sm:$0xff]  }
 0x51b   : > { %v896_v26 = vpack.c.bf16 %v892_v25, %v892_v25  ;;  %1741 = vmatprep.subr.bf16.mxu0 %v1980_v9  ;;  %v1859_v25 = vld [vmem:[%s2137_s17] sm:$0xff]  }
 0x51c   : > { %v1877_v27 = vpop.eup %1876 }
 0x51d   : > { %1724 = vmatmul.mubr.msk.bf16.vlgmr.msra.gmra.mxu1 %vm644_vm3, %v896_v26  ;;  %v893_v28 = vmul.f32 %v1877_v27, %v1869_v60  ;;  %v490_v26 = vld [vmem:[%s2142_s19 + $0x8] sm:$0x3] }
 0x51e   : > { %1737 = vmatprep.mubr.msk.bf16.mxu1 %vm1981_vm2, %v1980_v9  ;;  %1734 = vmatpush3.bf16.msra.mxu1 %v1854_v35  ;;  %v1208_v27 = vrot.slane %v490_v26, %v508_v19  ;;  %v1281_v19 = vrot.slane %v490_v26, %v513_v20 }
 0x51f   : > { %v897_v29 = vpack.c.bf16 %v893_v28, %v893_v28  ;;  %1735 = vmatprep.subr.bf16.mxu1 %v1980_v9 }
 0x521   : > { %1730 = vmatmul.mubr.msk.bf16.vlgmr.msra.gmra.mxu0 %vm644_vm3, %v897_v29 }
 0x522   : > { %1745 = vmatprep.mubr.msk.bf16.mxu0 %vm1981_vm2, %v1980_v9  ;;  %1736 = vmatpush3.bf16.msra.mxu1 %v1855_v36 }
 0x523   : > { %1749 = vmatprep.subr.bf16.mxu1 %v1980_v9  ;;  %1742 = vmatpush3.bf16.msra.mxu0 %v1856_v6 }
 0x524   : > { %1743 = vmatprep.subr.bf16.mxu0 %v1980_v9 }
 0x527   : > { %1744 = vmatpush3.bf16.msra.mxu0 %v1857_v7 }
 0x575   : > { %v942_v31 = vpop.f32.mrf.mxu1 }
 0x577   : > { %v1713_v32 = vpop.f32.mrf.mxu1 }
 0x579   : > { %v945_v33 = vpop.f32.mrf.mxu1 }
 0x57b   : > { %v1714_v34 = vpop.f32.mrf.mxu1 }
 0x5d9   : > { %v991_v37 = vpop.f32.mrf.mxu0 }
 0x5da   : > { %1096 = vrot.lane.b32.xlu0 %v991_v37, %s1988_s28 }
 0x5db   : > { %v1719_v38 = vpop.f32.mrf.mxu0 }
 0x5dd   : > { %v994_v39 = vpop.f32.mrf.mxu0  ;;  %v1040_v40 = vpop.f32.mrf.mxu1 }
 0x5de   : > { %1100 = vrot.lane.b32.xlu1 %v1040_v40, %s1989_s23 }
 0x5df   : > { %v1720_v41 = vpop.f32.mrf.mxu0  ;;  %v1725_v42 = vpop.f32.mrf.mxu1 }
 0x5e1   : > { %v1043_v43 = vpop.f32.mrf.mxu1  ;;  %v1089_v44 = vpop.f32.mrf.mxu0 }
 0x5e2   : > { %1104 = vrot.lane.b32.xlu0 %v1089_v44, %s1990_s27 }
 0x5e3   : > { %v1726_v45 = vpop.f32.mrf.mxu1  ;;  %v1731_v30 = vpop.f32.mrf.mxu0 }
 0x5e5   : > { %v1092_v46 = vpop.f32.mrf.mxu0 }
 0x5e7   : > { %v1732_v47 = vpop.f32.mrf.mxu0 }
 0x64c   : > { %v1097_v48 = vpop.permute.xlu0 %1096 }
 0x64d   : > { %v1107_v50 = vsel %vm644_vm3, %v942_v31, %v1097_v48 }
 0x650   : > { %v1101_v49 = vpop.permute.xlu1 %1100 }
 0x651   : > { %v1109_v51 = vsel %vm1108_vm5, %v1107_v50, %v1101_v49 }
 0x654   : > { %v1105_v52 = vpop.permute.xlu0 %1104 }
 0x655   : > { %v1111_v53 = vsel %vm1110_vm6, %v1109_v51, %v1105_v52 }
 0x656   : > { %v1112_v54 = vpack.c.bf16 %v1111_v53, %v1111_v53 }
 0x658   : > { %1738 = vmatmul.mubr.msk.bf16.vlgmr.msra.gmra.mxu1 %vm491_vm1, %v1112_v54 }
 0x659   : > { %1753 = vmatprep.mubr.msk.bf16.mxu1 %vm1981_vm2, %v1980_v9  ;;  %1750 = vmatpush3.bf16.msra.mxu1 %v1858_v24 }
 0x65a   : > { %1751 = vmatprep.subr.bf16.mxu1 %v1980_v9 }
 0x65d   : > { %1752 = vmatpush3.bf16.msra.mxu1 %v1859_v25 }
 0x718   : > { %v1170_v57 = vpop.f32.mrf.mxu1 }
 0x719   : > { %v1171_v58 = vadd.f32 %v1170_v57, %v1120_v56 }
 0x71a   : > { %v1739_v59 = vpop.f32.mrf.mxu1 }
 0x71b   : > { %v1176_v60 = vadd.f32 %v1171_v58, %v2154_v1 }
 0x71c   : > { %v1173_v61 = vpop.f32.mrf.mxu1 }
 0x71d   : > { %v1177_v62 = vsel %vm491_vm1, %v1176_v60, 0.0 }
 0x71e   : > { %1178 = vadd.xlane.f32.xlu1 %v1177_v62  ;;  %v1740_v63 = vpop.f32.mrf.mxu1 }
 0x7a7   : > { %v1179_v0 = vpop.xlane.xlu1 %1178 }
 0x7a8   : > { %v1180_v2 = vmul.f32 0.03125, %v1179_v0 }
 0x7aa   : > { %v1181_v3 = vsub.f32 %v1176_v60, %v1180_v2 }
 0x7ac   : > { %v1182_v4 = vmul.f32 %v1181_v3, %v1181_v3 }
 0x7ae   : > { %v1183_v5 = vsel %vm491_vm1, %v1182_v4, 0.0 }
 0x7af   : > { %1184 = vadd.xlane.f32.xlu0 %v1183_v5 }
 0x838   : > { %v1185_v1 = vpop.xlane.xlu0 %1184 }
 0x839   : > { %v1186_v8 = vmul.f32 0.03125, %v1185_v1 }
 0x83b   : > { %v1187_v10 = vadd.f32 1e-05, %v1186_v8 }
 0x83d   : > { %1878 = vrsqrt.f32 %v1187_v10 }
 0x84a   : > { %v1879_v16 = vpop.eup %1878 }
 0x84b   : > { %v1189_v17 = vmul.f32 %v1879_v16, %v1181_v3 }
 0x84d   : > { %v1194_v21 = vmul.f32 %v1193_v15, %v1189_v17 }
 0x84f   : > { %v1199_v22 = vadd.f32 %v1198_v18, %v1194_v21 }
 0x851   : > { %v1200_v23 = vpack.c.bf16 %v1199_v22, %v1199_v22 }
 0x853   : > { %1746 = vmatmul.mubr.msk.bf16.vlgmr.msra.gmra.mxu0 %vm491_vm1, %v1200_v23 }
 0x913   : > { %v1258_v28 = vpop.f32.mrf.mxu0 }
 0x914   : > { %v1259_v29 = vadd.f32 %v1258_v28, %v1208_v27 }
 0x915   : > { %v1747_v31 = vpop.f32.mrf.mxu0 }
 0x916   : > { %v1264_v32 = vmul.f32 %v1259_v29, %v1259_v29 }
 0x917   : > { %v1261_v14 = vpop.f32.mrf.mxu0 }
 0x918   : > { %v1265_v33 = vmul.f32 %v1264_v32, %v1259_v29 }
 0x919   : > { %v1748_v34 = vpop.f32.mrf.mxu0 }
 0x91a   : > { %v1266_v35 = vmul.f32 0.044715, %v1265_v33 }
 0x91c   : > { %v1267_v36 = vadd.f32 %v1266_v35, %v1259_v29 }
 0x91e   : > { %v1268_v37 = vmul.f32 0.7978846, %v1267_v36 }
 0x920   : > { %1880 = vtanh.f32 %v1268_v37 }
 0x92d   : > { %v1881_v38 = vpop.eup %1880 }
 0x92e   : > { %v1270_v39 = vadd.f32 1.0, %v1881_v38 }
 0x930   : > { %v1271_v9 = vmul.f32 0.5, %v1270_v39 }
 0x932   : > { %v1272_v40 = vmul.f32 %v1271_v9, %v1259_v29 }
 0x934   : > { %v1273_v41 = vpack.c.bf16 %v1272_v40, %v1272_v40 }
 0x936   : > { %1754 = vmatmul.mubr.msk.bf16.vlgmr.msra.gmra.mxu1 %vm491_vm1, %v1273_v41 }
 0x9f6   : > { %v1331_v42 = vpop.f32.mrf.mxu1 }
 0x9f7   : > { %v1332_v43 = vadd.f32 %v1331_v42, %v1281_v19 }
 0x9f8   : > { %v1755_v44 = vpop.f32.mrf.mxu1  ;;  %1342 = sbr.rel (%p1633_p1) target bundleno = 3074 (0xc02), region = 64 }
 0x9f9   : > { %v1337_v45 = vadd.f32 %v1332_v43, %v1176_v60 }
 0x9fa   : > { %v1334_v30 = vpop.f32.mrf.mxu1 }
 0x9fb   : > { %1338 = vst.msk [vmem:[#allocation2] sm:$0xff] %vm491_vm1, %v1337_v45 }
 0x9fc   : > { %v1756_v46 = vpop.f32.mrf.mxu1 }
 0x9fd   : > { %v1346_v47 = vld [vmem:[%s2367_s7 + $0x18] sm:$0xff]  ;;  %v1991_v48 = vmov 0.0   ;;  %v1345_v12 = vld [vmem:[%s2367_s7 + $0x10] sm:$0xff]  ;;  %vm1992_vm7 = vmmov 0   ;;  %v1344_v20 = vld [vmem:[%s2367_s7 + $0x8] sm:$0xff]  ;;  %vm1421_vm8 = vcmask 57344  }
 0x9fe   : > { %1757 = vmatprep.subr.mxu0 %v1991_v48  ;;  %1765 = vmatprep.mubr.msk.f32.mxu0 %vm1992_vm7, %v1991_v48  ;;  %v1343_v49 = vld [vmem:[%s2367_s7] sm:$0xff] }
 0x9ff   : > { %1758 = vmatpush3.msra.mxu0 %v1346_v47  ;;  %v1347_v50 = vld [vmem:[%s2368_s8] sm:$0x1] }
 0xa00   : > { %1759 = vmatprep.subr.mxu0 %v1991_v48 }
 0xa01   : > { %1760 = vmatpush3.msra.mxu0 %v1345_v12 }
 0xa02   : > { %1761 = vmatprep.subr.mxu0 %v1991_v48 }
 0xa03   : > { %1762 = vmatpush3.msra.mxu0 %v1344_v20 }
 0xa04   : > { %1763 = vmatprep.subr.mxu0 %v1991_v48 }
 0xa05   : > { %1764 = vmatpush3.msra.mxu0 %v1343_v49 }
 0xa06   : > { %1766 = vmatmul.mubr.msk.f32.vlgmr.msra.gmra.mxu0 %vm491_vm1, %v1337_v45 }
 0xac6   : > { %v1417_v51 = vpop.f32.mrf.mxu0 }
 0xac7   : > { %v1418_v52 = vadd.f32 %v1417_v51, %v1347_v50 }
 0xac8   : > { %v1767_v53 = vpop.f32.mrf.mxu0 }
 0xac9   : > { %v1422_v54 = vsel %vm1421_vm8, %v1418_v52, -inf }
 0xaca   : > { %1423 = vmax.xlane.f32.xlu0 %v1422_v54 }
 0xb53   : > { %v1424_v55 = vpop.xlane.xlu0 %1423 }
 0xb54   : > { %v1425_v56 = vsub.f32 %v1418_v52, %v1424_v55 }
 0xb56   : > { %v1426_v57 = vmul.f32 1.442695, %v1425_v56 }
 0xb58   : > { %1882 = vpow2.f32 %v1426_v57 }
 0xb65   : > { %v1883_v58 = vpop.eup %1882 }
 0xb66   : > { %v1428_v59 = vsel %vm1421_vm8, %v1883_v58, 0.0 }
 0xb67   : > { %1429 = vadd.xlane.f32.xlu0 %v1428_v59 }
 0xbf0   : > { %v1430_v60 = vpop.xlane.xlu0 %1429 }
 0xbf1   : > { %1884 = vrcp.f32 %v1430_v60 }
 0xbfe   : > { %v1885_v61 = vpop.eup %1884 }
 0xbff   : > { %v1432_v62 = vmul.f32 %v1885_v61, %v1883_v58 }
 0xc01   : > { %1433 = vst.msk [vmem:[%s2151_s22] sm:$0x1] %vm1421_vm8, %v1432_v62 }
 0xc02 PF: > { %s1635_s0 = sshll.u32 %s1966_s13, 4  ;;  %s1448_s20 = sshll.u32 %s2151_s22, 4  ;;  %s1449_s20 = int_to_ptr.vmem [resolvable:$true] %s1448_s20 }
 0xc03   : > { %s1446_s16 = scalar_lea.hbm %s2369_s9, %s1635_s0  ;;  %s2394_s26 = sand.u32 1, %s1954_s10  }
 0xc04   : > { %s1435_s28 = scalar_lea.sflag [#allocation4], %s2394_s26  ;;  %s1886_s23 = scalar_lea.vmem %s1449_s20, 16 }
 0xc05   : > { %p1887_p2 = scmp.ne.s32.totalorder %s1449_s20, %s1886_s23  ;;  %s1993_s27 = smov [#allocation3]  }
 0xc06   : > { %s1890_s30 = sshll.u32 %s1993_s27, 4  ;;  %s1891_s30 = int_to_ptr.vmem [resolvable:$false] %s1890_s30 }
 0xc07   : > { %p1888_p4 = pnand %p1887_p2, %p2093_p3  ;;  %s1892_s11 = scalar_lea.vmem %s1891_s30, 32 }
 0xc08   : > { %p1893_p6 = scmp.lt.s32.totalorder %s1449_s20, %s1891_s30  ;;  %p1894_p7 = scmp.lt.s32.totalorder %s1892_s11, %s1886_s23 }
 0xc09   : > { %p1889_p5 = pneg %p1888_p4 }
 0xc0a   : > { %p1895_p8 = por %p1894_p7, %p1893_p6 }
 0xc0c   : > { %p1896_p10 = pnand %p1895_p8, %p1889_p5 }
 0xc0e   : > { %1899 = shalt.err (!%p1896_p10)
}
 0xc0f   : > { %s1900_s13 = scalar_lea.hbm %s1446_s16, 16  ;;  %s1904_s29 = scalar_lea.hbm %s2369_s9, 32 }
 0xc10   : > { %p1901_p11 = scmp.ne.s32.totalorder %s1446_s16, %s1900_s13  ;;  %p1905_p0 = scmp.lt.s32.totalorder %s1446_s16, %s2369_s9 }
 0xc11   : > { %p1906_p1 = scmp.lt.s32.totalorder %s1904_s29, %s1900_s13 }
 0xc12   : > { %p1902_p12 = pnand %p1901_p11, %p2093_p3 }
 0xc13   : > { %p1907_p2 = por %p1906_p1, %p1905_p0 }
 0xc14   : > { %p1903_p13 = pneg %p1902_p12 }
 0xc16   : > { %p1908_p4 = pnand %p1907_p2, %p1903_p13 }
 0xc18   : > { %1911 = shalt.err (!%p1908_p4)
}
 0xc19   : > { %1768 = dma.vmem_to_hbm [thread:$0]  (%p2093_p3), %s1449_s20, 16, %s1446_s16, %s1435_s28  }
 0xc1a PF: > { %s2395_s12 = sld [smem:[#allocation10_spill]] }
 0xc1b   : > { %s2396_s24 = sld [smem:[#allocation6_spill]] }
 0xc20   : > { %p1774_p5 = scmp.ge.s32.totalorder %s2395_s12, 2 }
 0xc21   : > { %s1460_s25 = sand.u32 1, %s2396_s24  }
 0xc22   : > { %p1771_p6 = pnand %p1774_p5, %p2103_p9  ;;  %s1461_s0 = scalar_lea.sflag [#allocation4], %s1460_s25 }
 0xc24   : > { %p1772_p7 = pneg %p1771_p6 }
 0xc26   : > { %1945 = dma.done.wait (%p1772_p7), %s1461_s0, 16  }
 0xc27   : > { %1947 = vsyncadd (%p1772_p7), %s1461_s0, 4294967280  ;;  %s22_s16 = sadd.s32 1, %s2395_s12   ;;  %s2398_s1 = sld [smem:[#allocation7_spill]] }
 0xc28   : > { %p19_p8 = scmp.ge.s32.totalorder %s22_s16, 8   ;;  %s2399_s11 = sld [smem:[#allocation14_spill]] }
 0xc29   : > { %s2400_s12 = sld [smem:[#allocation8_spill]]  ;;  %s2404_s30 = smov %s1954_s10 }
 0xc2a   : > { %s2401_s13 = sld [smem:[#allocation9_spill]]  ;;  %21 = sbr.rel (!%p19_p8) target bundleno = 8 (0x8), region = 119 }
 0xc2b   : > { %s2402_s14 = sld [smem:[#allocation11_spill]] }
 0xc2c   : > { %s2403_s15 = sld [smem:[#allocation12_spill]] }
 0xc2d   : > { %s2405_s10 = smov %s2398_s1 }
 0xc2f   :  { %1465 = vsyncpa [#allocation4], 1 }
 0xc30   :  { %1467 = vsyncpa [#allocation4 + $0x1], 1 }

</bundles_post_ra>
